<compile_context>
chip_gen: v6e
topology: v6e:2x2x1
jax: 0.10.0
libtpu: 0.0.40
codegen_flags: <defaults>
</compile_context>

<pallas_src>
import functools

import jax
import jax.numpy as jnp
from jax import lax
from jax.experimental import pallas as pl
from jax.experimental.pallas import tpu as pltpu


def _gru_decoder_kernel(x_ref, h0_ref, wih_ref, whh_ref, bhn_ref,
                        fcw_ref, fcb_ref, hid_ref, out_ref, gi_ref, *,
                        hidden_pad, batch_pad, t_chunk, tail_steps,
                        matmul_dtype, unroll):
    Hp = hidden_pad
    Bp = batch_pad
    chunk = pl.program_id(0)
    last = pl.num_programs(0) - 1

    # Chunk 0: seed the carried hidden state (hid_ref is resident across the grid).
    @pl.when(chunk == 0)
    def _():
        hid_ref[...] = h0_ref[...]

    # --- Hoisted input projection for this chunk: one big MXU matmul. ---
    # x_ref block is (t_chunk * Bp, F+1) time-major; the last column is ones and the
    # last row of wih_ref is the folded bias (b_ih all gates + b_hh for r/z).
    gi_ref[...] = jnp.dot(x_ref[...].astype(matmul_dtype), wih_ref[...],
                          preferred_element_type=jnp.float32)

    whh = whh_ref[...]                                   # (Hp, 3*Hp), matmul_dtype
    bhn = jnp.broadcast_to(bhn_ref[...], (Bp, Hp))       # hoisted out of the loop

    def step(t, h):
        row = pl.multiple_of(t * Bp, Bp)
        g = gi_ref[pl.ds(row, Bp), :]                    # (Bp, 3*Hp), lane-aligned
        gh = jnp.dot(h.astype(matmul_dtype), whh,
                     preferred_element_type=jnp.float32)
        r = jax.nn.sigmoid(g[:, 0:Hp] + gh[:, 0:Hp])
        z = jax.nn.sigmoid(g[:, Hp:2 * Hp] + gh[:, Hp:2 * Hp])
        n = jnp.tanh(g[:, 2 * Hp:3 * Hp] + r * (gh[:, 2 * Hp:3 * Hp] + bhn))
        return (1.0 - z) * n + z * h

    def run_steps(n_steps):
        return lax.fori_loop(0, n_steps, step, hid_ref[...],
                             unroll=max(1, min(unroll, n_steps)))

    def fc_head(h):
        # VPU multiply + lane reduce, written to a lane-dense (Bp, 128) block.
        fc = jnp.sum(h * fcw_ref[...], axis=-1, keepdims=True) + fcb_ref[...]
        out_ref[...] = jnp.broadcast_to(fc, out_ref.shape)

    if tail_steps == t_chunk:
        # Uniform chunks: every chunk runs exactly t_chunk steps (no masking).
        h = run_steps(t_chunk)
        hid_ref[...] = h

        @pl.when(chunk == last)
        def _():
            fc_head(h)
    else:
        # Ragged tail: the last chunk runs a shorter STATIC-trip loop, so no dead
        # timesteps and no per-step select anywhere.
        @pl.when(chunk != last)
        def _():
            hid_ref[...] = run_steps(t_chunk)

        @pl.when(chunk == last)
        def _():
            h = run_steps(tail_steps)
            hid_ref[...] = h
            fc_head(h)


def _round_up(n, m):
    return ((n + m - 1) // m) * m


def _vmem_limit_bytes(working_set_bytes):
    """Generation-aware VMEM budget (v5e/v6e: 128 MiB, v7x: 64 MiB per TC)."""
    try:
        physical = int(pltpu.get_tpu_info().vmem_capacity_bytes)
    except Exception:
        physical = 64 << 20          # conservative fallback (v7x per-TensorCore)
    cap = (physical * 4) // 5        # headroom for pipeline buffers / internal scratch
    return int(min(max(working_set_bytes + (8 << 20), 16 << 20), cap))


def gru_decoder_forward(x, h, params, *, t_chunk=None, matmul_dtype=jnp.float32):
    """x: (B, T, F) f32, h: (1, B, H) f32  ->  (out (B, 1), hidden (1, B, H)).

    matmul_dtype=jnp.bfloat16 casts the weights and streamed x for the MXU matmuls
    (f32 accumulation, f32 gate math); use looser tolerances vs an f32 reference.
    """
    B, T, F = x.shape
    H = h.shape[-1]

    Bp = _round_up(B, 8)       # sublane multiple (f32)
    Hp = _round_up(H, 128)     # lane multiple -> unmasked per-gate vreg tiles
    GH = 3 * Hp
    Fb = F + 1                 # +1 ones column carrying the folded GI bias

    # Bigger chunks amortize per-grid-step overhead; the recurrence is serial, so
    # fewer/larger chunks are strictly better until VMEM bites (tiny at F=4, Hp=128).
    if t_chunk is None:
        t_chunk = 512
    t_chunk = max(1, min(int(t_chunk), T))
    n_chunks = pl.cdiv(T, t_chunk)
    Tp = n_chunks * t_chunk
    tail_steps = T - (n_chunks - 1) * t_chunk            # static; in (0, t_chunk]

    # Time-major, batch-padded, flattened to 2D: rows [t*Bp:(t+1)*Bp] = timestep t.
    # The appended ones column folds the GI bias into the matmul (zeros in pad rows).
    ones = jnp.ones((B, T, 1), x.dtype)
    x_tm = jnp.transpose(jnp.concatenate([x, ones], axis=-1), (1, 0, 2))   # (T,B,F+1)
    x_tm = jnp.pad(x_tm, ((0, Tp - T), (0, Bp - B), (0, 0)))
    x2d = x_tm.reshape(Tp * Bp, Fb)

    h0 = jnp.pad(h[0], ((0, Bp - B), (0, Hp - H)))                         # (Bp, Hp)

    def pad_gate_rows(w):      # (3H, X) -> (3*Hp, X): pad each gate block to Hp rows
        wg = w.reshape(3, H, -1)
        wg = jnp.pad(wg, ((0, 0), (0, Hp - H), (0, 0)))
        return wg.reshape(3 * Hp, -1)

    def pad_gate_vec(b):       # (3H,) -> (3*Hp,)
        return jnp.pad(b.reshape(3, H), ((0, 0), (0, Hp - H))).reshape(3 * Hp)

    b_ih_p = pad_gate_vec(params["b_ih"])
    b_hh_p = pad_gate_vec(params["b_hh"])
    # Fold b_hh of the r/z gates into the GI bias; b_hn stays inside tanh (scaled by r).
    b_comb = b_ih_p.at[:2 * Hp].add(b_hh_p[:2 * Hp])                        # (3*Hp,)

    wih_t = jnp.concatenate(
        [pad_gate_rows(params["w_ih"]).T, b_comb[None, :]],
        axis=0).astype(matmul_dtype)                                        # (F+1, 3*Hp)
    whh_t = jnp.pad(pad_gate_rows(params["w_hh"]),
                    ((0, 0), (0, Hp - H))).T.astype(matmul_dtype)           # (Hp, 3*Hp)
    bhn = b_hh_p[2 * Hp:][None, :]                                          # (1, Hp)
    fcw = jnp.pad(params["fc_w"], ((0, 0), (0, Hp - H)))                    # (1, Hp)
    fcb = params["fc_b"].reshape(1, 1)                                      # (1, 1)

    kernel = functools.partial(
        _gru_decoder_kernel, hidden_pad=Hp, batch_pad=Bp, t_chunk=t_chunk,
        tail_steps=tail_steps, matmul_dtype=matmul_dtype, unroll=8)

    md_b = jnp.dtype(matmul_dtype).itemsize
    f32b = 4
    working = (2 * t_chunk * Bp * Fb * f32b              # streamed x chunk (dbl-buffer)
               + t_chunk * Bp * GH * f32b                # GI scratch
               + 2 * (Fb + Hp) * GH * md_b               # weights (dbl-buffered)
               + 8 * Bp * max(Hp, 128) * f32b)           # h0/hid/out/bias/head
    vmem_limit = _vmem_limit_bytes(working)

    hidden_pad_out, out_pad = pl.pallas_call(
        kernel,
        out_shape=(jax.ShapeDtypeStruct((Bp, Hp), jnp.float32),
                   jax.ShapeDtypeStruct((Bp, 128), jnp.float32)),
        grid_spec=pltpu.PrefetchScalarGridSpec(
            num_scalar_prefetch=0,
            grid=(n_chunks,),
            in_specs=[
                pl.BlockSpec((t_chunk * Bp, Fb), lambda c: (c, 0)),   # x chunk (streamed)
                pl.BlockSpec((Bp, Hp), lambda c: (0, 0)),             # h0
                pl.BlockSpec((Fb, GH), lambda c: (0, 0)),             # [W_ih^T; bias row]
                pl.BlockSpec((Hp, GH), lambda c: (0, 0)),             # W_hh^T (gate-padded)
                pl.BlockSpec((1, Hp), lambda c: (0, 0)),              # b_hn
                pl.BlockSpec((1, Hp), lambda c: (0, 0)),              # fc_w
                pl.BlockSpec((1, 1), lambda c: (0, 0)),               # fc_b
            ],
            out_specs=(pl.BlockSpec((Bp, Hp), lambda c: (0, 0)),      # carried hidden
                       pl.BlockSpec((Bp, 128), lambda c: (0, 0))),    # lane-dense out
            scratch_shapes=[pltpu.VMEM((t_chunk * Bp, GH), jnp.float32)],
        ),
        compiler_params=pltpu.CompilerParams(
            dimension_semantics=("arbitrary",),   # recurrence: chunks run sequentially
            vmem_limit_bytes=vmem_limit),
    )(x2d, h0, wih_t, whh_t, bhn, fcw, fcb)

    out = out_pad[:B, :1]
    hidden = hidden_pad_out[:B, :H][None, :, :]
    return out, hidden


def _reference_forward(x, h, params):
    """Pure-JAX reference mirroring PyTorch nn.GRU + nn.Linear semantics."""
    H = h.shape[-1]
    w_ih, w_hh = params["w_ih"], params["w_hh"]
    b_ih, b_hh = params["b_ih"], params["b_hh"]

    def cell(h_prev, x_t):
        gi = x_t @ w_ih.T + b_ih
        gh = h_prev @ w_hh.T + b_hh
        r = jax.nn.sigmoid(gi[:, :H] + gh[:, :H])
        z = jax.nn.sigmoid(gi[:, H:2 * H] + gh[:, H:2 * H])
        n = jnp.tanh(gi[:, 2 * H:] + r * gh[:, 2 * H:])
        h_new = (1.0 - z) * n + z * h_prev
        return h_new, None

    h_final, _ = lax.scan(cell, h[0], jnp.transpose(x, (1, 0, 2)))
    out = h_final @ params["fc_w"].T + params["fc_b"]
    return out, h_final[None, :, :]


def init_params(key, features, embedded_size):
    """Deterministic init; matches PyTorch shapes (num_layers=1, unidirectional)."""
    k = 1.0 / jnp.sqrt(embedded_size)
    keys = jax.random.split(key, 6)
    return {
        "w_ih": jax.random.uniform(keys[0], (3 * embedded_size, features), jnp.float32, -k, k),
        "w_hh": jax.random.uniform(keys[1], (3 * embedded_size, embedded_size), jnp.float32, -k, k),
        "b_ih": jax.random.uniform(keys[2], (3 * embedded_size,), jnp.float32, -k, k),
        "b_hh": jax.random.uniform(keys[3], (3 * embedded_size,), jnp.float32, -k, k),
        "fc_w": jax.random.uniform(keys[4], (1, embedded_size), jnp.float32, -k, k),
        "fc_b": jax.random.uniform(keys[5], (1,), jnp.float32, -k, k),
    }


if __name__ == "__main__":
    # Config 1: the module's nominal small shapes (single chunk, no tail), f32 parity.
    B, T, F, H = 2, 8, 4, 32
    key = jax.random.PRNGKey(0)
    kx, kh, kp = jax.random.split(key, 3)
    x = jax.random.normal(kx, (B, T, F), jnp.float32)
    h = jax.random.normal(kh, (1, B, H), jnp.float32)
    params = init_params(kp, F, H)

    out, hidden = gru_decoder_forward(x, h, params)
    out, hidden = jax.block_until_ready((out, hidden))
    out_ref, hidden_ref = _reference_forward(x, h, params)
    assert out.shape == (B, 1) and hidden.shape == (1, B, H)
    assert jnp.allclose(out, out_ref, atol=5e-5, rtol=5e-5)
    assert jnp.allclose(hidden, hidden_ref, atol=5e-5, rtol=5e-5)

    # Config 2: multi-chunk time grid (carried hidden), static tail loop, B/H padding.
    B2, T2, F2, H2 = 3, 10, 4, 48
    k2 = jax.random.split(key, 4)
    x2 = jax.random.normal(k2[0], (B2, T2, F2), jnp.float32)
    h2 = jax.random.normal(k2[1], (1, B2, H2), jnp.float32)
    p2 = init_params(k2[2], F2, H2)
    out2, hidden2 = gru_decoder_forward(x2, h2, p2, t_chunk=4)
    out2, hidden2 = jax.block_until_ready((out2, hidden2))
    out2_ref, hidden2_ref = _reference_forward(x2, h2, p2)
    assert jnp.allclose(out2, out2_ref, atol=5e-5, rtol=5e-5)
    assert jnp.allclose(hidden2, hidden2_ref, atol=5e-5, rtol=5e-5)

    # Config 3: bf16 weights/x on the MXU (v6e/v7x perf guidance), f32 gate math.
    out3, hidden3 = gru_decoder_forward(x, h, params, matmul_dtype=jnp.bfloat16)
    out3, hidden3 = jax.block_until_ready((out3, hidden3))
    assert jnp.allclose(out3, out_ref, atol=1e-1, rtol=1e-1)
    assert jnp.allclose(hidden3, hidden_ref, atol=1e-1, rtol=1e-1)

    print("KERNEL_OK")
</pallas_src>

<mosaic_0001>
module attributes {stable_mosaic.version = 11 : i64} {
  func.func @_gru_decoder_kernel(%arg0: i32, %arg1: memref<64x5xf32, #tpu.memory_space<vmem>>, %arg2: memref<8x128xf32, #tpu.memory_space<vmem>>, %arg3: memref<5x384xf32, #tpu.memory_space<vmem>>, %arg4: memref<128x384xf32, #tpu.memory_space<vmem>>, %arg5: memref<1x128xf32, #tpu.memory_space<vmem>>, %arg6: memref<1x128xf32, #tpu.memory_space<vmem>>, %arg7: memref<1x1xf32, #tpu.memory_space<vmem>>, %arg8: memref<8x128xf32, #tpu.memory_space<vmem>>, %arg9: memref<8x128xf32, #tpu.memory_space<vmem>>, %arg10: memref<64x384xf32, #tpu.memory_space<vmem>>) attributes {dimension_semantics = [#tpu.dimension_semantics<arbitrary>], iteration_bounds = array<i64: 1>, scalar_prefetch = 0 : i64, scratch_operands = 1 : i64, tpu.core_type = #tpu.core_type<tc>, window_params = [{transform_indices = @transform_0, window_bounds = array<i64: 64, 5>}, {pipeline_mode = #tpu.pipeline_mode<synchronous>, transform_indices = @transform_1, window_bounds = array<i64: 8, 128>}, {pipeline_mode = #tpu.pipeline_mode<synchronous>, transform_indices = @transform_2, window_bounds = array<i64: 5, 384>}, {pipeline_mode = #tpu.pipeline_mode<synchronous>, transform_indices = @transform_3, window_bounds = array<i64: 128, 384>}, {pipeline_mode = #tpu.pipeline_mode<synchronous>, transform_indices = @transform_4, window_bounds = array<i64: 1, 128>}, {pipeline_mode = #tpu.pipeline_mode<synchronous>, transform_indices = @transform_5, window_bounds = array<i64: 1, 128>}, {pipeline_mode = #tpu.pipeline_mode<synchronous>, transform_indices = @transform_6, window_bounds = array<i64: 1, 1>}, {pipeline_mode = #tpu.pipeline_mode<synchronous>, transform_indices = @transform_7, window_bounds = array<i64: 8, 128>}, {pipeline_mode = #tpu.pipeline_mode<synchronous>, transform_indices = @transform_8, window_bounds = array<i64: 8, 128>}]} {
    %c0_i32 = arith.constant 0 : i32
    %0 = arith.cmpi eq, %arg0, %c0_i32 : i32
    %1 = arith.extui %0 : i1 to i32
    %c0_i32_0 = arith.constant 0 : i32
    %2 = arith.cmpi ne, %1, %c0_i32_0 : i32
    scf.if %2 {
      %c0_65 = arith.constant 0 : index
      %c0_66 = arith.constant 0 : index
      %272 = vector.load %arg2[%c0_65, %c0_66] : memref<8x128xf32, #tpu.memory_space<vmem>>, vector<8x128xf32>
      %c0_67 = arith.constant 0 : index
      %c0_68 = arith.constant 0 : index
      %273 = vector.load %arg8[%c0_67, %c0_68] : memref<8x128xf32, #tpu.memory_space<vmem>>, vector<8x128xf32>
      tpu.vector_store %arg8[%c0_67, %c0_68], %272 {strides = array<i32>} : memref<8x128xf32, #tpu.memory_space<vmem>>, vector<8x128xf32>,
    } else {
    }
    %c0 = arith.constant 0 : index
    %c0_1 = arith.constant 0 : index
    %3 = vector.load %arg1[%c0, %c0_1] : memref<64x5xf32, #tpu.memory_space<vmem>>, vector<64x5xf32>
    %c0_2 = arith.constant 0 : index
    %c0_3 = arith.constant 0 : index
    %4 = vector.load %arg3[%c0_2, %c0_3] : memref<5x384xf32, #tpu.memory_space<vmem>>, vector<5x384xf32>
    %cst = arith.constant dense<0.000000e+00> : vector<64x384xf32>
    %5 = tpu.matmul %3, %4, %cst {dimension_numbers = #tpu.dot_dimension_numbers<[1], [0], [0], [1], [0, 0, 1, 1], [], []>} : vector<64x5xf32>, vector<5x384xf32>, vector<64x384xf32> -> vector<64x384xf32>
    %c0_4 = arith.constant 0 : index
    %c0_5 = arith.constant 0 : index
    %6 = vector.load %arg10[%c0_4, %c0_5] : memref<64x384xf32, #tpu.memory_space<vmem>>, vector<64x384xf32>
    tpu.vector_store %arg10[%c0_4, %c0_5], %5 {strides = array<i32>} : memref<64x384xf32, #tpu.memory_space<vmem>>, vector<64x384xf32>,
    %c0_6 = arith.constant 0 : index
    %c0_7 = arith.constant 0 : index
    %7 = vector.load %arg4[%c0_6, %c0_7] : memref<128x384xf32, #tpu.memory_space<vmem>>, vector<128x384xf32>
    %c0_8 = arith.constant 0 : index
    %c0_9 = arith.constant 0 : index
    %8 = vector.load %arg5[%c0_8, %c0_9] : memref<1x128xf32, #tpu.memory_space<vmem>>, vector<1x128xf32>
    %9 = vector.shape_cast %8 : vector<1x128xf32> to vector<1x128xf32>
    %10 = vector.broadcast %9 : vector<1x128xf32> to vector<8x128xf32>
    %c0_10 = arith.constant 0 : index
    %c0_11 = arith.constant 0 : index
    %11 = vector.load %arg8[%c0_10, %c0_11] : memref<8x128xf32, #tpu.memory_space<vmem>>, vector<8x128xf32>
    %c0_i32_12 = arith.constant 0 : i32
    %c8_i32 = arith.constant 8 : i32
    %12 = arith.muli %c0_i32_12, %c8_i32 : i32
    %13 = tpu.assume_multiple %12, 8 : i32
    %14 = arith.index_cast %13 : i32 to index
    %c0_13 = arith.constant 0 : index
    %15 = vector.load %arg10[%14, %c0_13] : memref<64x384xf32, #tpu.memory_space<vmem>>, vector<8x384xf32>
    %cst_14 = arith.constant dense<0.000000e+00> : vector<8x384xf32>
    %16 = tpu.matmul %11, %7, %cst_14 {dimension_numbers = #tpu.dot_dimension_numbers<[1], [0], [0], [1], [0, 0, 1, 1], [], []>} : vector<8x128xf32>, vector<128x384xf32>, vector<8x384xf32> -> vector<8x384xf32>
    %17 = vector.extract_strided_slice %15 {offsets = [0, 0], sizes = [8, 128], strides = [1, 1]} : vector<8x384xf32> to vector<8x128xf32>
    %18 = vector.extract_strided_slice %16 {offsets = [0, 0], sizes = [8, 128], strides = [1, 1]} : vector<8x384xf32> to vector<8x128xf32>
    %19 = arith.addf %17, %18 : vector<8x128xf32>
    %20 = arith.negf %19 : vector<8x128xf32>
    %21 = math.exp %20 : vector<8x128xf32>
    %cst_15 = arith.constant 1.000000e+00 : f32
    %22 = vector.broadcast %cst_15 : f32 to vector<8x128xf32>
    %23 = arith.addf %22, %21 : vector<8x128xf32>
    %24 = arith.divf %22, %23 : vector<8x128xf32>
    %25 = vector.extract_strided_slice %15 {offsets = [0, 128], sizes = [8, 128], strides = [1, 1]} : vector<8x384xf32> to vector<8x128xf32>
    %26 = vector.extract_strided_slice %16 {offsets = [0, 128], sizes = [8, 128], strides = [1, 1]} : vector<8x384xf32> to vector<8x128xf32>
    %27 = arith.addf %25, %26 : vector<8x128xf32>
    %28 = arith.negf %27 : vector<8x128xf32>
    %29 = math.exp %28 : vector<8x128xf32>
    %cst_16 = arith.constant 1.000000e+00 : f32
    %30 = vector.broadcast %cst_16 : f32 to vector<8x128xf32>
    %31 = arith.addf %30, %29 : vector<8x128xf32>
    %32 = arith.divf %30, %31 : vector<8x128xf32>
    %33 = vector.extract_strided_slice %15 {offsets = [0, 256], sizes = [8, 128], strides = [1, 1]} : vector<8x384xf32> to vector<8x128xf32>
    %34 = vector.extract_strided_slice %16 {offsets = [0, 256], sizes = [8, 128], strides = [1, 1]} : vector<8x384xf32> to vector<8x128xf32>
    %35 = arith.addf %34, %10 : vector<8x128xf32>
    %36 = arith.mulf %24, %35 : vector<8x128xf32>
    %37 = arith.addf %33, %36 : vector<8x128xf32>
    %38 = math.tanh %37 : vector<8x128xf32>
    %cst_17 = arith.constant 1.000000e+00 : f32
    %39 = vector.broadcast %cst_17 : f32 to vector<8x128xf32>
    %40 = arith.subf %39, %32 : vector<8x128xf32>
    %41 = arith.mulf %40, %38 : vector<8x128xf32>
    %42 = arith.mulf %32, %11 : vector<8x128xf32>
    %43 = arith.addf %41, %42 : vector<8x128xf32>
    %c1_i32 = arith.constant 1 : i32
    %c8_i32_18 = arith.constant 8 : i32
    %44 = arith.muli %c1_i32, %c8_i32_18 : i32
    %45 = tpu.assume_multiple %44, 8 : i32
    %46 = arith.index_cast %45 : i32 to index
    %c0_19 = arith.constant 0 : index
    %47 = vector.load %arg10[%46, %c0_19] : memref<64x384xf32, #tpu.memory_space<vmem>>, vector<8x384xf32>
    %cst_20 = arith.constant dense<0.000000e+00> : vector<8x384xf32>
    %48 = tpu.matmul %43, %7, %cst_20 {dimension_numbers = #tpu.dot_dimension_numbers<[1], [0], [0], [1], [0, 0, 1, 1], [], []>} : vector<8x128xf32>, vector<128x384xf32>, vector<8x384xf32> -> vector<8x384xf32>
    %49 = vector.extract_strided_slice %47 {offsets = [0, 0], sizes = [8, 128], strides = [1, 1]} : vector<8x384xf32> to vector<8x128xf32>
    %50 = vector.extract_strided_slice %48 {offsets = [0, 0], sizes = [8, 128], strides = [1, 1]} : vector<8x384xf32> to vector<8x128xf32>
    %51 = arith.addf %49, %50 : vector<8x128xf32>
    %52 = arith.negf %51 : vector<8x128xf32>
    %53 = math.exp %52 : vector<8x128xf32>
    %cst_21 = arith.constant 1.000000e+00 : f32
    %54 = vector.broadcast %cst_21 : f32 to vector<8x128xf32>
    %55 = arith.addf %54, %53 : vector<8x128xf32>
    %56 = arith.divf %54, %55 : vector<8x128xf32>
    %57 = vector.extract_strided_slice %47 {offsets = [0, 128], sizes = [8, 128], strides = [1, 1]} : vector<8x384xf32> to vector<8x128xf32>
    %58 = vector.extract_strided_slice %48 {offsets = [0, 128], sizes = [8, 128], strides = [1, 1]} : vector<8x384xf32> to vector<8x128xf32>
    %59 = arith.addf %57, %58 : vector<8x128xf32>
    %60 = arith.negf %59 : vector<8x128xf32>
    %61 = math.exp %60 : vector<8x128xf32>
    %cst_22 = arith.constant 1.000000e+00 : f32
    %62 = vector.broadcast %cst_22 : f32 to vector<8x128xf32>
    %63 = arith.addf %62, %61 : vector<8x128xf32>
    %64 = arith.divf %62, %63 : vector<8x128xf32>
    %65 = vector.extract_strided_slice %47 {offsets = [0, 256], sizes = [8, 128], strides = [1, 1]} : vector<8x384xf32> to vector<8x128xf32>
    %66 = vector.extract_strided_slice %48 {offsets = [0, 256], sizes = [8, 128], strides = [1, 1]} : vector<8x384xf32> to vector<8x128xf32>
    %67 = arith.addf %66, %10 : vector<8x128xf32>
    %68 = arith.mulf %56, %67 : vector<8x128xf32>
    %69 = arith.addf %65, %68 : vector<8x128xf32>
    %70 = math.tanh %69 : vector<8x128xf32>
    %cst_23 = arith.constant 1.000000e+00 : f32
    %71 = vector.broadcast %cst_23 : f32 to vector<8x128xf32>
    %72 = arith.subf %71, %64 : vector<8x128xf32>
    %73 = arith.mulf %72, %70 : vector<8x128xf32>
    %74 = arith.mulf %64, %43 : vector<8x128xf32>
    %75 = arith.addf %73, %74 : vector<8x128xf32>
    %c2_i32 = arith.constant 2 : i32
    %c8_i32_24 = arith.constant 8 : i32
    %76 = arith.muli %c2_i32, %c8_i32_24 : i32
    %77 = tpu.assume_multiple %76, 8 : i32
    %78 = arith.index_cast %77 : i32 to index
    %c0_25 = arith.constant 0 : index
    %79 = vector.load %arg10[%78, %c0_25] : memref<64x384xf32, #tpu.memory_space<vmem>>, vector<8x384xf32>
    %cst_26 = arith.constant dense<0.000000e+00> : vector<8x384xf32>
    %80 = tpu.matmul %75, %7, %cst_26 {dimension_numbers = #tpu.dot_dimension_numbers<[1], [0], [0], [1], [0, 0, 1, 1], [], []>} : vector<8x128xf32>, vector<128x384xf32>, vector<8x384xf32> -> vector<8x384xf32>
    %81 = vector.extract_strided_slice %79 {offsets = [0, 0], sizes = [8, 128], strides = [1, 1]} : vector<8x384xf32> to vector<8x128xf32>
    %82 = vector.extract_strided_slice %80 {offsets = [0, 0], sizes = [8, 128], strides = [1, 1]} : vector<8x384xf32> to vector<8x128xf32>
    %83 = arith.addf %81, %82 : vector<8x128xf32>
    %84 = arith.negf %83 : vector<8x128xf32>
    %85 = math.exp %84 : vector<8x128xf32>
    %cst_27 = arith.constant 1.000000e+00 : f32
    %86 = vector.broadcast %cst_27 : f32 to vector<8x128xf32>
    %87 = arith.addf %86, %85 : vector<8x128xf32>
    %88 = arith.divf %86, %87 : vector<8x128xf32>
    %89 = vector.extract_strided_slice %79 {offsets = [0, 128], sizes = [8, 128], strides = [1, 1]} : vector<8x384xf32> to vector<8x128xf32>
    %90 = vector.extract_strided_slice %80 {offsets = [0, 128], sizes = [8, 128], strides = [1, 1]} : vector<8x384xf32> to vector<8x128xf32>
    %91 = arith.addf %89, %90 : vector<8x128xf32>
    %92 = arith.negf %91 : vector<8x128xf32>
    %93 = math.exp %92 : vector<8x128xf32>
    %cst_28 = arith.constant 1.000000e+00 : f32
    %94 = vector.broadcast %cst_28 : f32 to vector<8x128xf32>
    %95 = arith.addf %94, %93 : vector<8x128xf32>
    %96 = arith.divf %94, %95 : vector<8x128xf32>
    %97 = vector.extract_strided_slice %79 {offsets = [0, 256], sizes = [8, 128], strides = [1, 1]} : vector<8x384xf32> to vector<8x128xf32>
    %98 = vector.extract_strided_slice %80 {offsets = [0, 256], sizes = [8, 128], strides = [1, 1]} : vector<8x384xf32> to vector<8x128xf32>
    %99 = arith.addf %98, %10 : vector<8x128xf32>
    %100 = arith.mulf %88, %99 : vector<8x128xf32>
    %101 = arith.addf %97, %100 : vector<8x128xf32>
    %102 = math.tanh %101 : vector<8x128xf32>
    %cst_29 = arith.constant 1.000000e+00 : f32
    %103 = vector.broadcast %cst_29 : f32 to vector<8x128xf32>
    %104 = arith.subf %103, %96 : vector<8x128xf32>
    %105 = arith.mulf %104, %102 : vector<8x128xf32>
    %106 = arith.mulf %96, %75 : vector<8x128xf32>
    %107 = arith.addf %105, %106 : vector<8x128xf32>
    %c3_i32 = arith.constant 3 : i32
    %c8_i32_30 = arith.constant 8 : i32
    %108 = arith.muli %c3_i32, %c8_i32_30 : i32
    %109 = tpu.assume_multiple %108, 8 : i32
    %110 = arith.index_cast %109 : i32 to index
    %c0_31 = arith.constant 0 : index
    %111 = vector.load %arg10[%110, %c0_31] : memref<64x384xf32, #tpu.memory_space<vmem>>, vector<8x384xf32>
    %cst_32 = arith.constant dense<0.000000e+00> : vector<8x384xf32>
    %112 = tpu.matmul %107, %7, %cst_32 {dimension_numbers = #tpu.dot_dimension_numbers<[1], [0], [0], [1], [0, 0, 1, 1], [], []>} : vector<8x128xf32>, vector<128x384xf32>, vector<8x384xf32> -> vector<8x384xf32>
    %113 = vector.extract_strided_slice %111 {offsets = [0, 0], sizes = [8, 128], strides = [1, 1]} : vector<8x384xf32> to vector<8x128xf32>
    %114 = vector.extract_strided_slice %112 {offsets = [0, 0], sizes = [8, 128], strides = [1, 1]} : vector<8x384xf32> to vector<8x128xf32>
    %115 = arith.addf %113, %114 : vector<8x128xf32>
    %116 = arith.negf %115 : vector<8x128xf32>
    %117 = math.exp %116 : vector<8x128xf32>
    %cst_33 = arith.constant 1.000000e+00 : f32
    %118 = vector.broadcast %cst_33 : f32 to vector<8x128xf32>
    %119 = arith.addf %118, %117 : vector<8x128xf32>
    %120 = arith.divf %118, %119 : vector<8x128xf32>
    %121 = vector.extract_strided_slice %111 {offsets = [0, 128], sizes = [8, 128], strides = [1, 1]} : vector<8x384xf32> to vector<8x128xf32>
    %122 = vector.extract_strided_slice %112 {offsets = [0, 128], sizes = [8, 128], strides = [1, 1]} : vector<8x384xf32> to vector<8x128xf32>
    %123 = arith.addf %121, %122 : vector<8x128xf32>
    %124 = arith.negf %123 : vector<8x128xf32>
    %125 = math.exp %124 : vector<8x128xf32>
    %cst_34 = arith.constant 1.000000e+00 : f32
    %126 = vector.broadcast %cst_34 : f32 to vector<8x128xf32>
    %127 = arith.addf %126, %125 : vector<8x128xf32>
    %128 = arith.divf %126, %127 : vector<8x128xf32>
    %129 = vector.extract_strided_slice %111 {offsets = [0, 256], sizes = [8, 128], strides = [1, 1]} : vector<8x384xf32> to vector<8x128xf32>
    %130 = vector.extract_strided_slice %112 {offsets = [0, 256], sizes = [8, 128], strides = [1, 1]} : vector<8x384xf32> to vector<8x128xf32>
    %131 = arith.addf %130, %10 : vector<8x128xf32>
    %132 = arith.mulf %120, %131 : vector<8x128xf32>
    %133 = arith.addf %129, %132 : vector<8x128xf32>
    %134 = math.tanh %133 : vector<8x128xf32>
    %cst_35 = arith.constant 1.000000e+00 : f32
    %135 = vector.broadcast %cst_35 : f32 to vector<8x128xf32>
    %136 = arith.subf %135, %128 : vector<8x128xf32>
    %137 = arith.mulf %136, %134 : vector<8x128xf32>
    %138 = arith.mulf %128, %107 : vector<8x128xf32>
    %139 = arith.addf %137, %138 : vector<8x128xf32>
    %c4_i32 = arith.constant 4 : i32
    %c8_i32_36 = arith.constant 8 : i32
    %140 = arith.muli %c4_i32, %c8_i32_36 : i32
    %141 = tpu.assume_multiple %140, 8 : i32
    %142 = arith.index_cast %141 : i32 to index
    %c0_37 = arith.constant 0 : index
    %143 = vector.load %arg10[%142, %c0_37] : memref<64x384xf32, #tpu.memory_space<vmem>>, vector<8x384xf32>
    %cst_38 = arith.constant dense<0.000000e+00> : vector<8x384xf32>
    %144 = tpu.matmul %139, %7, %cst_38 {dimension_numbers = #tpu.dot_dimension_numbers<[1], [0], [0], [1], [0, 0, 1, 1], [], []>} : vector<8x128xf32>, vector<128x384xf32>, vector<8x384xf32> -> vector<8x384xf32>
    %145 = vector.extract_strided_slice %143 {offsets = [0, 0], sizes = [8, 128], strides = [1, 1]} : vector<8x384xf32> to vector<8x128xf32>
    %146 = vector.extract_strided_slice %144 {offsets = [0, 0], sizes = [8, 128], strides = [1, 1]} : vector<8x384xf32> to vector<8x128xf32>
    %147 = arith.addf %145, %146 : vector<8x128xf32>
    %148 = arith.negf %147 : vector<8x128xf32>
    %149 = math.exp %148 : vector<8x128xf32>
    %cst_39 = arith.constant 1.000000e+00 : f32
    %150 = vector.broadcast %cst_39 : f32 to vector<8x128xf32>
    %151 = arith.addf %150, %149 : vector<8x128xf32>
    %152 = arith.divf %150, %151 : vector<8x128xf32>
    %153 = vector.extract_strided_slice %143 {offsets = [0, 128], sizes = [8, 128], strides = [1, 1]} : vector<8x384xf32> to vector<8x128xf32>
    %154 = vector.extract_strided_slice %144 {offsets = [0, 128], sizes = [8, 128], strides = [1, 1]} : vector<8x384xf32> to vector<8x128xf32>
    %155 = arith.addf %153, %154 : vector<8x128xf32>
    %156 = arith.negf %155 : vector<8x128xf32>
    %157 = math.exp %156 : vector<8x128xf32>
    %cst_40 = arith.constant 1.000000e+00 : f32
    %158 = vector.broadcast %cst_40 : f32 to vector<8x128xf32>
    %159 = arith.addf %158, %157 : vector<8x128xf32>
    %160 = arith.divf %158, %159 : vector<8x128xf32>
    %161 = vector.extract_strided_slice %143 {offsets = [0, 256], sizes = [8, 128], strides = [1, 1]} : vector<8x384xf32> to vector<8x128xf32>
    %162 = vector.extract_strided_slice %144 {offsets = [0, 256], sizes = [8, 128], strides = [1, 1]} : vector<8x384xf32> to vector<8x128xf32>
    %163 = arith.addf %162, %10 : vector<8x128xf32>
    %164 = arith.mulf %152, %163 : vector<8x128xf32>
    %165 = arith.addf %161, %164 : vector<8x128xf32>
    %166 = math.tanh %165 : vector<8x128xf32>
    %cst_41 = arith.constant 1.000000e+00 : f32
    %167 = vector.broadcast %cst_41 : f32 to vector<8x128xf32>
    %168 = arith.subf %167, %160 : vector<8x128xf32>
    %169 = arith.mulf %168, %166 : vector<8x128xf32>
    %170 = arith.mulf %160, %139 : vector<8x128xf32>
    %171 = arith.addf %169, %170 : vector<8x128xf32>
    %c5_i32 = arith.constant 5 : i32
    %c8_i32_42 = arith.constant 8 : i32
    %172 = arith.muli %c5_i32, %c8_i32_42 : i32
    %173 = tpu.assume_multiple %172, 8 : i32
    %174 = arith.index_cast %173 : i32 to index
    %c0_43 = arith.constant 0 : index
    %175 = vector.load %arg10[%174, %c0_43] : memref<64x384xf32, #tpu.memory_space<vmem>>, vector<8x384xf32>
    %cst_44 = arith.constant dense<0.000000e+00> : vector<8x384xf32>
    %176 = tpu.matmul %171, %7, %cst_44 {dimension_numbers = #tpu.dot_dimension_numbers<[1], [0], [0], [1], [0, 0, 1, 1], [], []>} : vector<8x128xf32>, vector<128x384xf32>, vector<8x384xf32> -> vector<8x384xf32>
    %177 = vector.extract_strided_slice %175 {offsets = [0, 0], sizes = [8, 128], strides = [1, 1]} : vector<8x384xf32> to vector<8x128xf32>
    %178 = vector.extract_strided_slice %176 {offsets = [0, 0], sizes = [8, 128], strides = [1, 1]} : vector<8x384xf32> to vector<8x128xf32>
    %179 = arith.addf %177, %178 : vector<8x128xf32>
    %180 = arith.negf %179 : vector<8x128xf32>
    %181 = math.exp %180 : vector<8x128xf32>
    %cst_45 = arith.constant 1.000000e+00 : f32
    %182 = vector.broadcast %cst_45 : f32 to vector<8x128xf32>
    %183 = arith.addf %182, %181 : vector<8x128xf32>
    %184 = arith.divf %182, %183 : vector<8x128xf32>
    %185 = vector.extract_strided_slice %175 {offsets = [0, 128], sizes = [8, 128], strides = [1, 1]} : vector<8x384xf32> to vector<8x128xf32>
    %186 = vector.extract_strided_slice %176 {offsets = [0, 128], sizes = [8, 128], strides = [1, 1]} : vector<8x384xf32> to vector<8x128xf32>
    %187 = arith.addf %185, %186 : vector<8x128xf32>
    %188 = arith.negf %187 : vector<8x128xf32>
    %189 = math.exp %188 : vector<8x128xf32>
    %cst_46 = arith.constant 1.000000e+00 : f32
    %190 = vector.broadcast %cst_46 : f32 to vector<8x128xf32>
    %191 = arith.addf %190, %189 : vector<8x128xf32>
    %192 = arith.divf %190, %191 : vector<8x128xf32>
    %193 = vector.extract_strided_slice %175 {offsets = [0, 256], sizes = [8, 128], strides = [1, 1]} : vector<8x384xf32> to vector<8x128xf32>
    %194 = vector.extract_strided_slice %176 {offsets = [0, 256], sizes = [8, 128], strides = [1, 1]} : vector<8x384xf32> to vector<8x128xf32>
    %195 = arith.addf %194, %10 : vector<8x128xf32>
    %196 = arith.mulf %184, %195 : vector<8x128xf32>
    %197 = arith.addf %193, %196 : vector<8x128xf32>
    %198 = math.tanh %197 : vector<8x128xf32>
    %cst_47 = arith.constant 1.000000e+00 : f32
    %199 = vector.broadcast %cst_47 : f32 to vector<8x128xf32>
    %200 = arith.subf %199, %192 : vector<8x128xf32>
    %201 = arith.mulf %200, %198 : vector<8x128xf32>
    %202 = arith.mulf %192, %171 : vector<8x128xf32>
    %203 = arith.addf %201, %202 : vector<8x128xf32>
    %c6_i32 = arith.constant 6 : i32
    %c8_i32_48 = arith.constant 8 : i32
    %204 = arith.muli %c6_i32, %c8_i32_48 : i32
    %205 = tpu.assume_multiple %204, 8 : i32
    %206 = arith.index_cast %205 : i32 to index
    %c0_49 = arith.constant 0 : index
    %207 = vector.load %arg10[%206, %c0_49] : memref<64x384xf32, #tpu.memory_space<vmem>>, vector<8x384xf32>
    %cst_50 = arith.constant dense<0.000000e+00> : vector<8x384xf32>
    %208 = tpu.matmul %203, %7, %cst_50 {dimension_numbers = #tpu.dot_dimension_numbers<[1], [0], [0], [1], [0, 0, 1, 1], [], []>} : vector<8x128xf32>, vector<128x384xf32>, vector<8x384xf32> -> vector<8x384xf32>
    %209 = vector.extract_strided_slice %207 {offsets = [0, 0], sizes = [8, 128], strides = [1, 1]} : vector<8x384xf32> to vector<8x128xf32>
    %210 = vector.extract_strided_slice %208 {offsets = [0, 0], sizes = [8, 128], strides = [1, 1]} : vector<8x384xf32> to vector<8x128xf32>
    %211 = arith.addf %209, %210 : vector<8x128xf32>
    %212 = arith.negf %211 : vector<8x128xf32>
    %213 = math.exp %212 : vector<8x128xf32>
    %cst_51 = arith.constant 1.000000e+00 : f32
    %214 = vector.broadcast %cst_51 : f32 to vector<8x128xf32>
    %215 = arith.addf %214, %213 : vector<8x128xf32>
    %216 = arith.divf %214, %215 : vector<8x128xf32>
    %217 = vector.extract_strided_slice %207 {offsets = [0, 128], sizes = [8, 128], strides = [1, 1]} : vector<8x384xf32> to vector<8x128xf32>
    %218 = vector.extract_strided_slice %208 {offsets = [0, 128], sizes = [8, 128], strides = [1, 1]} : vector<8x384xf32> to vector<8x128xf32>
    %219 = arith.addf %217, %218 : vector<8x128xf32>
    %220 = arith.negf %219 : vector<8x128xf32>
    %221 = math.exp %220 : vector<8x128xf32>
    %cst_52 = arith.constant 1.000000e+00 : f32
    %222 = vector.broadcast %cst_52 : f32 to vector<8x128xf32>
    %223 = arith.addf %222, %221 : vector<8x128xf32>
    %224 = arith.divf %222, %223 : vector<8x128xf32>
    %225 = vector.extract_strided_slice %207 {offsets = [0, 256], sizes = [8, 128], strides = [1, 1]} : vector<8x384xf32> to vector<8x128xf32>
    %226 = vector.extract_strided_slice %208 {offsets = [0, 256], sizes = [8, 128], strides = [1, 1]} : vector<8x384xf32> to vector<8x128xf32>
    %227 = arith.addf %226, %10 : vector<8x128xf32>
    %228 = arith.mulf %216, %227 : vector<8x128xf32>
    %229 = arith.addf %225, %228 : vector<8x128xf32>
    %230 = math.tanh %229 : vector<8x128xf32>
    %cst_53 = arith.constant 1.000000e+00 : f32
    %231 = vector.broadcast %cst_53 : f32 to vector<8x128xf32>
    %232 = arith.subf %231, %224 : vector<8x128xf32>
    %233 = arith.mulf %232, %230 : vector<8x128xf32>
    %234 = arith.mulf %224, %203 : vector<8x128xf32>
    %235 = arith.addf %233, %234 : vector<8x128xf32>
    %c7_i32 = arith.constant 7 : i32
    %c8_i32_54 = arith.constant 8 : i32
    %236 = arith.muli %c7_i32, %c8_i32_54 : i32
    %237 = tpu.assume_multiple %236, 8 : i32
    %238 = arith.index_cast %237 : i32 to index
    %c0_55 = arith.constant 0 : index
    %239 = vector.load %arg10[%238, %c0_55] : memref<64x384xf32, #tpu.memory_space<vmem>>, vector<8x384xf32>
    %cst_56 = arith.constant dense<0.000000e+00> : vector<8x384xf32>
    %240 = tpu.matmul %235, %7, %cst_56 {dimension_numbers = #tpu.dot_dimension_numbers<[1], [0], [0], [1], [0, 0, 1, 1], [], []>} : vector<8x128xf32>, vector<128x384xf32>, vector<8x384xf32> -> vector<8x384xf32>
    %241 = vector.extract_strided_slice %239 {offsets = [0, 0], sizes = [8, 128], strides = [1, 1]} : vector<8x384xf32> to vector<8x128xf32>
    %242 = vector.extract_strided_slice %240 {offsets = [0, 0], sizes = [8, 128], strides = [1, 1]} : vector<8x384xf32> to vector<8x128xf32>
    %243 = arith.addf %241, %242 : vector<8x128xf32>
    %244 = arith.negf %243 : vector<8x128xf32>
    %245 = math.exp %244 : vector<8x128xf32>
    %cst_57 = arith.constant 1.000000e+00 : f32
    %246 = vector.broadcast %cst_57 : f32 to vector<8x128xf32>
    %247 = arith.addf %246, %245 : vector<8x128xf32>
    %248 = arith.divf %246, %247 : vector<8x128xf32>
    %249 = vector.extract_strided_slice %239 {offsets = [0, 128], sizes = [8, 128], strides = [1, 1]} : vector<8x384xf32> to vector<8x128xf32>
    %250 = vector.extract_strided_slice %240 {offsets = [0, 128], sizes = [8, 128], strides = [1, 1]} : vector<8x384xf32> to vector<8x128xf32>
    %251 = arith.addf %249, %250 : vector<8x128xf32>
    %252 = arith.negf %251 : vector<8x128xf32>
    %253 = math.exp %252 : vector<8x128xf32>
    %cst_58 = arith.constant 1.000000e+00 : f32
    %254 = vector.broadcast %cst_58 : f32 to vector<8x128xf32>
    %255 = arith.addf %254, %253 : vector<8x128xf32>
    %256 = arith.divf %254, %255 : vector<8x128xf32>
    %257 = vector.extract_strided_slice %239 {offsets = [0, 256], sizes = [8, 128], strides = [1, 1]} : vector<8x384xf32> to vector<8x128xf32>
    %258 = vector.extract_strided_slice %240 {offsets = [0, 256], sizes = [8, 128], strides = [1, 1]} : vector<8x384xf32> to vector<8x128xf32>
    %259 = arith.addf %258, %10 : vector<8x128xf32>
    %260 = arith.mulf %248, %259 : vector<8x128xf32>
    %261 = arith.addf %257, %260 : vector<8x128xf32>
    %262 = math.tanh %261 : vector<8x128xf32>
    %cst_59 = arith.constant 1.000000e+00 : f32
    %263 = vector.broadcast %cst_59 : f32 to vector<8x128xf32>
    %264 = arith.subf %263, %256 : vector<8x128xf32>
    %265 = arith.mulf %264, %262 : vector<8x128xf32>
    %266 = arith.mulf %256, %235 : vector<8x128xf32>
    %267 = arith.addf %265, %266 : vector<8x128xf32>
    %c8_i32_60 = arith.constant 8 : i32
    %c0_61 = arith.constant 0 : index
    %c0_62 = arith.constant 0 : index
    %268 = vector.load %arg8[%c0_61, %c0_62] : memref<8x128xf32, #tpu.memory_space<vmem>>, vector<8x128xf32>
    tpu.vector_store %arg8[%c0_61, %c0_62], %267 {strides = array<i32>} : memref<8x128xf32, #tpu.memory_space<vmem>>, vector<8x128xf32>,
    %c0_i32_63 = arith.constant 0 : i32
    %269 = arith.cmpi eq, %arg0, %c0_i32_63 : i32
    %270 = arith.extui %269 : i1 to i32
    %c0_i32_64 = arith.constant 0 : i32
    %271 = arith.cmpi ne, %270, %c0_i32_64 : i32
    scf.if %271 {
      %c0_65 = arith.constant 0 : index
      %c0_66 = arith.constant 0 : index
      %272 = vector.load %arg6[%c0_65, %c0_66] : memref<1x128xf32, #tpu.memory_space<vmem>>, vector<1x128xf32>
      %273 = vector.broadcast %272 : vector<1x128xf32> to vector<8x128xf32>
      %274 = arith.mulf %267, %273 : vector<8x128xf32>
      %cst_67 = arith.constant dense<0.000000e+00> : vector<8xf32>
      %275 = vector.multi_reduction <add>, %274, %cst_67 [1] : vector<8x128xf32> to vector<8xf32>
      %276 = vector.shape_cast %275 : vector<8xf32> to vector<8x1xf32>
      %c0_68 = arith.constant 0 : index
      %c0_69 = arith.constant 0 : index
      %277 = vector.load %arg7[%c0_68, %c0_69] : memref<1x1xf32, #tpu.memory_space<vmem>>, vector<1x1xf32>
      %278 = vector.broadcast %277 : vector<1x1xf32> to vector<8x1xf32>
      %279 = arith.addf %276, %278 : vector<8x1xf32>
      %280 = vector.shape_cast %279 : vector<8x1xf32> to vector<8x1xf32>
      %281 = vector.broadcast %280 : vector<8x1xf32> to vector<8x128xf32>
      %c0_70 = arith.constant 0 : index
      %c0_71 = arith.constant 0 : index
      %282 = vector.load %arg9[%c0_70, %c0_71] : memref<8x128xf32, #tpu.memory_space<vmem>>, vector<8x128xf32>
      tpu.vector_store %arg9[%c0_70, %c0_71], %281 {strides = array<i32>} : memref<8x128xf32, #tpu.memory_space<vmem>>, vector<8x128xf32>,
    } else {
    }
    return
  }
  func.func @transform_0(%arg0: i32) -> (i32, i32) {
    %c0_i32 = arith.constant 0 : i32
    %c0_i32_0 = arith.constant 0 : i32
    return %arg0, %c0_i32 : i32, i32
  }
  func.func @transform_1(%arg0: i32) -> (i32, i32) {
    %c0_i32 = arith.constant 0 : i32
    %c0_i32_0 = arith.constant 0 : i32
    %c0_i32_1 = arith.constant 0 : i32
    return %c0_i32, %c0_i32_0 : i32, i32
  }
  func.func @transform_2(%arg0: i32) -> (i32, i32) {
    %c0_i32 = arith.constant 0 : i32
    %c0_i32_0 = arith.constant 0 : i32
    %c0_i32_1 = arith.constant 0 : i32
    return %c0_i32, %c0_i32_0 : i32, i32
  }
  func.func @transform_3(%arg0: i32) -> (i32, i32) {
    %c0_i32 = arith.constant 0 : i32
    %c0_i32_0 = arith.constant 0 : i32
    %c0_i32_1 = arith.constant 0 : i32
    return %c0_i32, %c0_i32_0 : i32, i32
  }
  func.func @transform_4(%arg0: i32) -> (i32, i32) {
    %c0_i32 = arith.constant 0 : i32
    %c0_i32_0 = arith.constant 0 : i32
    %c0_i32_1 = arith.constant 0 : i32
    return %c0_i32, %c0_i32_0 : i32, i32
  }
  func.func @transform_5(%arg0: i32) -> (i32, i32) {
    %c0_i32 = arith.constant 0 : i32
    %c0_i32_0 = arith.constant 0 : i32
    %c0_i32_1 = arith.constant 0 : i32
    return %c0_i32, %c0_i32_0 : i32, i32
  }
  func.func @transform_6(%arg0: i32) -> (i32, i32) {
    %c0_i32 = arith.constant 0 : i32
    %c0_i32_0 = arith.constant 0 : i32
    %c0_i32_1 = arith.constant 0 : i32
    return %c0_i32, %c0_i32_0 : i32, i32
  }
  func.func @transform_7(%arg0: i32) -> (i32, i32) {
    %c0_i32 = arith.constant 0 : i32
    %c0_i32_0 = arith.constant 0 : i32
    %c0_i32_1 = arith.constant 0 : i32
    return %c0_i32, %c0_i32_0 : i32, i32
  }
  func.func @transform_8(%arg0: i32) -> (i32, i32) {
    %c0_i32 = arith.constant 0 : i32
    %c0_i32_0 = arith.constant 0 : i32
    %c0_i32_1 = arith.constant 0 : i32
    return %c0_i32, %c0_i32_0 : i32, i32
  }
}

</mosaic_0001>

<bundles_post_ra>
// kernel: tpu_custom_call.1
= control target key start
LH: loop header
LB: loop body
LE: loop exit
PB: predicated region body
PF: predicated region fallthrough
CT: control target
= control target key end

     0   :  { %s3481_s0 = inlined_call_operand.vmem [shape: f32[64,5], index: 0, kind: input, shape index: {}]   ;;  %s3482_s1 = inlined_call_operand.vmem [shape: f32[8,128], index: 1, kind: input, shape index: {}]   ;;  %s3483_s2 = inlined_call_operand.vmem [shape: f32[5,384], index: 2, kind: input, shape index: {}]   ;;  %s3484_s3 = inlined_call_operand.hbm [shape: f32[128,384], index: 3, kind: input, shape index: {}]   ;;  %s3485_s4 = inlined_call_operand.vmem [shape: f32[1,128], index: 4, kind: input, shape index: {}]   ;;  %s3486_s5 = inlined_call_operand.vmem [shape: f32[1,128], index: 5, kind: input, shape index: {}]   ;;  %s3487_s6 = inlined_call_operand.<no memory space> [shape: f32[1,1], index: 6, kind: input, shape index: {}]   ;;  %s3488_s7 = inlined_call_operand.hbm [shape: f32[8,128], index: 7, kind: output, shape index: {0}]   ;;  %s3489_s8 = inlined_call_operand.hbm [shape: f32[8,128], index: 8, kind: output, shape index: {1}]  }
   0x1   :  { %v14_v0 = vstv %s3487_s6 }
   0x2   :  { %15 = vst [vmem:[#allocation3] sm:$0x1] %v14_v0 }
   0x3   :  { %16 = vsyncpa [#allocation5], 0 }
   0x4   :  { %17 = vsyncpa [#allocation6], 0 }
   0x5   :  { %18 = vsyncpa [#allocation9], 0  ;;  %s2493_s29 = smov [#allocation4]  }
   0x6   :  { %s30_s30 = sshll.u32 %s2493_s29, 4  ;;  %s31_s30 = int_to_ptr.vmem [resolvable:$true] %s30_s30 }
   0x7   :  { %s2435_s9 = scalar_lea.vmem %s31_s30, 6144  ;;  %p2440_p1 = scmp.lt.s32.totalorder %s31_s30, %s31_s30 }
   0x8   :  { %p2436_p0 = scmp.ne.s32.totalorder %s31_s30, %s2435_s9  ;;  %p2441_p2 = scmp.lt.s32.totalorder %s2435_s9, %s2435_s9 }
   0xa   :  { %p2442_p3 = por %p2441_p2, %p2440_p1 }
   0xc   :  { %p2443_p4 = pnand %p2442_p3, %p2436_p0 }
   0xe   :  { %2446 = shalt.err (!%p2443_p4)
}
   0xf   :  { %s2494_s10 = smov 384   ;;  %s2495_s11 = smov 24  }
  0x10   :  { %36 = dma.hbm_to_vmem [thread:$0]  %s3484_s3, 6144, %s31_s30, [#allocation5], %s2494_s10, %s2494_s10, %s2495_s11  }
  0x11   :  { %2487 = dma.done.wait [#allocation5], 6144  }
  0x12   :  { %2488 = vsyncadd [#allocation5], 4294961152  ;;  %v3490_v1 = vmov 0.0   ;;  %vm88_vm0 = vcmask 1044480   ;;  %v61_v2 = vld [vmem:[%s3483_s2 + $0x8] sm:$0x1f] }
  0x13   :  { %162 = vmatprep.mubr.f32.mxu0 %v3490_v1  ;;  %v60_v3 = vld [vmem:[%s3483_s2] sm:$0x1f]  ;;  %vm63_vm1 = vcmask 39936   ;;  %1812 = vmatprep.subr.msk.mxu0 %vm88_vm0, %v61_v2  ;;  %v2563_v5 = vld [vmem:[#allocation4 + $0x170] sm:$0xff]  ;;  %v2565_v6 = vld [vmem:[#allocation4 + $0x168] sm:$0xff]  ;;  %vm2497_vm2 = vmmov 0  }
  0x14   :  { %v52_v4 = vld [vmem:[%s3481_s0] sm:$0xff]  ;;  %3506 = vst [vmem:[#allocation13_spill] sm:$0xff] %v2563_v5  ;;  %1813 = vmatpush1.msk.msra.mxu0 %vm88_vm0, %v60_v3  ;;  %v2573_v8 = vld [vmem:[#allocation4 + $0x150] sm:$0xff]  ;;  %v53_v9 = vld [vmem:[%s3481_s0 + $0x8] sm:$0xff]  ;;  %s2499_s15 = smov [#allocation7]  }
  0x15   :  { %1997 = vmatprep.mubr.msk.f32.mxu1 %vm63_vm1, %v52_v4  ;;  %v2569_v7 = vld [vmem:[#allocation4 + $0x158] sm:$0xff]  ;;  %1814 = vmatmul.mubr.msk.f32.vlgmr.msra.gmra.mxu0 %vm63_vm1, %v52_v4  ;;  %v2580_v10 = vld [vmem:[#allocation4 + $0x140] sm:$0xff]  ;;  %v2586_v12 = vld [vmem:[#allocation4 + $0x128] sm:$0xff]  ;;  %s1782_s16 = sshll.u32 %s2499_s15, 4  ;;  %s1783_s16 = int_to_ptr.vmem [resolvable:$true] %s1782_s16 }
  0x16   :  { %402 = vmatprep.subr.mxu0 %v2563_v5  ;;  %168 = vmatprep.mubr.f32.mxu0 %v3490_v1  ;;  %v2583_v11 = vld [vmem:[#allocation4 + $0x138] sm:$0xff]  ;;  %v2590_v13 = vld [vmem:[#allocation4 + $0x120] sm:$0xff]  ;;  %v2597_v14 = vld [vmem:[%s3481_s0 + $0x10] sm:$0xff]  ;;  %s2447_s17 = scalar_lea.vmem %s1783_s16, 128  ;;  %p2452_p6 = scmp.lt.s32.totalorder %s1783_s16, %s1783_s16 }
  0x17   :  { %403 = vmatpush1.msra.mxu0 %v2565_v6  ;;  %v2599_v15 = vld [vmem:[#allocation4 + $0x110] sm:$0xff]  ;;  %v2602_v16 = vld [vmem:[#allocation4 + $0x108] sm:$0xff]  ;;  %v2605_v17 = vld [vmem:[#allocation4 + $0xf8] sm:$0xff]  ;;  %p2448_p5 = scmp.ne.s32.totalorder %s1783_s16, %s2447_s17  ;;  %p2453_p7 = scmp.lt.s32.totalorder %s2447_s17, %s2447_s17 }
  0x18   :  { %404 = vmatprep.subr.mxu0 %v2569_v7  ;;  %v2610_v18 = vld [vmem:[#allocation4 + $0xf0] sm:$0xff]  ;;  %v2619_v20 = vld [vmem:[#allocation4 + $0xe0] sm:$0xff]  ;;  %v2622_v21 = vld [vmem:[#allocation4 + $0xd8] sm:$0xff] }
  0x19   :  { %405 = vmatpush1.msra.mxu0 %v2573_v8  ;;  %v2617_v19 = vld [vmem:[%s3481_s0 + $0x18] sm:$0xff]  ;;  %v62_v22 = vld [vmem:[%s3483_s2 + $0x10] sm:$0x1f]  ;;  %v2634_v24 = vld [vmem:[#allocation4 + $0xc0] sm:$0xff]  ;;  %p2454_p8 = por %p2453_p7, %p2452_p6 }
  0x1a   :  { %1815 = vmatmul.mubr.msk.f32.gmra.mxu0 %vm63_vm1, %v53_v9  ;;  %406 = vmatprep.subr.mxu0 %v2580_v10  ;;  %v2628_v23 = vld [vmem:[#allocation4 + $0xc8] sm:$0xff]  ;;  %v2641_v25 = vld [vmem:[%s3481_s0 + $0x20] sm:$0xff]  ;;  %v2643_v26 = vld [vmem:[#allocation4 + $0xb0] sm:$0xff] }
  0x1b   :  { %407 = vmatpush1.msra.mxu0 %v2583_v11  ;;  %174 = vmatprep.mubr.f32.mxu0 %v3490_v1  ;;  %v2646_v27 = vld [vmem:[#allocation4 + $0xa8] sm:$0xff]  ;;  %v2650_v28 = vld [vmem:[#allocation4 + $0x98] sm:$0xff]  ;;  %v2656_v29 = vld [vmem:[#allocation4 + $0x90] sm:$0xff]  ;;  %p2455_p9 = pnand %p2454_p8, %p2448_p5 }
  0x1c   :  { %408 = vmatprep.subr.mxu0 %v2586_v12  ;;  %1995 = vmatprep.subr.msk.mxu1 %vm88_vm0, %v62_v22  ;;  %v2658_v30 = vld [vmem:[#allocation4 + $0x178] sm:$0xff]  ;;  %v2665_v31 = vld [vmem:[%s3481_s0 + $0x28] sm:$0xff]  ;;  %v58_v37 = vld [vmem:[%s3481_s0 + $0x30] sm:$0xff] }
  0x1d   :  { %409 = vmatpush1.msra.mxu0 %v2590_v13  ;;  %1996 = vmatpush3.msk.msra.mxu1 %vm88_vm0, %v62_v22  ;;  %v2667_v32 = vld [vmem:[#allocation4 + $0x80] sm:$0xff]  ;;  %v2670_v33 = vld [vmem:[#allocation4 + $0x78] sm:$0xff]  ;;  %v2674_v34 = vld [vmem:[#allocation4 + $0x68] sm:$0xff] }
  0x1e   :  { %1816 = vmatmul.mubr.msk.f32.gmra.mxu0 %vm63_vm1, %v2597_v14  ;;  %410 = vmatprep.subr.mxu0 %v2599_v15  ;;  %v2680_v35 = vld [vmem:[#allocation4 + $0x60] sm:$0xff]  ;;  %v2689_v38 = vld [vmem:[#allocation4 + $0x50] sm:$0xff]  ;;  %v2692_v39 = vld [vmem:[#allocation4 + $0x48] sm:$0xff] }
  0x1f   :  { %411 = vmatpush1.msra.mxu0 %v2602_v16  ;;  %180 = vmatprep.mubr.f32.mxu0 %v3490_v1  ;;  %v2682_v36 = vld [vmem:[#allocation4 + $0x160] sm:$0xff]  ;;  %v2696_v40 = vld [vmem:[#allocation4 + $0x38] sm:$0xff]  ;;  %v2701_v41 = vld [vmem:[#allocation4 + $0x30] sm:$0xff] }
  0x20   :  { %412 = vmatprep.subr.mxu0 %v2605_v17  ;;  %2009 = vmatprep.subr.mxu1 %v3490_v1  ;;  %v2703_v42 = vld [vmem:[#allocation4 + $0x148] sm:$0xff]  ;;  %v59_v43 = vld [vmem:[%s3481_s0 + $0x38] sm:$0xff]  ;;  %v2710_v44 = vld [vmem:[#allocation4 + $0x20] sm:$0xff] }
  0x21   :  { %413 = vmatpush1.msra.mxu0 %v2610_v18  ;;  %1998 = vmatmul.mubr.msk.f32.vlgmr.msra.gmra.mxu1 %vm63_vm1, %v53_v9  ;;  %v2713_v45 = vld [vmem:[#allocation4 + $0x18] sm:$0xff]  ;;  %v2717_v46 = vld [vmem:[#allocation4 + $0x8] sm:$0xff]  ;;  %v2722_v47 = vld [vmem:[#allocation4] sm:$0xff] }
  0x22   :  { %1817 = vmatmul.mubr.msk.f32.gmra.mxu0 %vm63_vm1, %v2617_v19  ;;  %414 = vmatprep.subr.mxu0 %v2619_v20  ;;  %3507 = vst [vmem:[#allocation14_spill] sm:$0xff] %v2717_v46  ;;  %3508 = vst [vmem:[#allocation15_spill] sm:$0xff] %v2722_v47  ;;  %v2724_v48 = vld [vmem:[#allocation4 + $0x130] sm:$0xff]  ;;  %v2731_v49 = vld [vmem:[%s3482_s1] sm:$0xff] }
  0x23   :  { %415 = vmatpush1.msra.mxu0 %v2622_v21  ;;  %186 = vmatprep.mubr.f32.mxu0 %v3490_v1  ;;  %v2735_v50 = vld [vmem:[#allocation4 + $0x118] sm:$0xff]  ;;  %v2741_v51 = vld [vmem:[#allocation4 + $0x100] sm:$0xff]  ;;  %v2747_v52 = vld [vmem:[#allocation4 + $0xe8] sm:$0xff] }
  0x24   :  { %416 = vmatprep.subr.mxu0 %v2628_v23  ;;  %2010 = vmatpush3.msra.mxu1 %v2658_v30  ;;  %v2755_v53 = vld [vmem:[#allocation4 + $0xd0] sm:$0xff]  ;;  %v2761_v54 = vld [vmem:[#allocation4 + $0xb8] sm:$0xff]  ;;  %v2768_v55 = vld [vmem:[#allocation4 + $0xa0] sm:$0xff] }
  0x25   :  { %417 = vmatpush1.msra.mxu0 %v2634_v24  ;;  %2011 = vmatprep.subr.mxu1 %v3490_v1  ;;  %v2774_v56 = vld [vmem:[#allocation4 + $0x88] sm:$0xff]  ;;  %v2781_v57 = vld [vmem:[#allocation4 + $0x70] sm:$0xff]  ;;  %v2787_v58 = vld [vmem:[#allocation4 + $0x58] sm:$0xff] }
  0x26   :  { %1818 = vmatmul.mubr.msk.f32.gmra.mxu0 %vm63_vm1, %v2641_v25  ;;  %418 = vmatprep.subr.mxu0 %v2643_v26  ;;  %v2793_v59 = vld [vmem:[#allocation4 + $0x40] sm:$0xff]  ;;  %v2799_v60 = vld [vmem:[#allocation4 + $0x28] sm:$0xff]  ;;  %v2805_v61 = vld [vmem:[#allocation4 + $0x10] sm:$0xff] }
  0x27   :  { %419 = vmatpush1.msra.mxu0 %v2646_v27  ;;  %192 = vmatprep.mubr.f32.mxu0 %v3490_v1  ;;  %3509 = vst [vmem:[#allocation16_spill] sm:$0xff] %v2799_v60  ;;  %3510 = vst [vmem:[#allocation17_spill] sm:$0xff] %v2805_v61 }
  0x28   :  { %420 = vmatprep.subr.mxu0 %v2650_v28  ;;  %2012 = vmatpush3.msra.mxu1 %v2682_v36 }
  0x29   :  { %421 = vmatpush1.msra.mxu0 %v2656_v29  ;;  %2013 = vmatprep.subr.mxu1 %v3490_v1 }
  0x2a   :  { %1819 = vmatmul.mubr.msk.f32.gmra.mxu0 %vm63_vm1, %v2665_v31  ;;  %422 = vmatprep.subr.mxu0 %v2667_v32 }
  0x2b   :  { %423 = vmatpush1.msra.mxu0 %v2670_v33  ;;  %198 = vmatprep.mubr.f32.mxu0 %v3490_v1 }
  0x2c   :  { %424 = vmatprep.subr.mxu0 %v2674_v34  ;;  %2014 = vmatpush3.msra.mxu1 %v2703_v42 }
  0x2d   :  { %425 = vmatpush1.msra.mxu0 %v2680_v35  ;;  %2015 = vmatprep.subr.mxu1 %v3490_v1 }
  0x2e   :  { %1820 = vmatmul.mubr.msk.f32.gmra.mxu0 %vm63_vm1, %v58_v37  ;;  %426 = vmatprep.subr.mxu0 %v2689_v38 }
  0x2f   :  { %427 = vmatpush1.msra.mxu0 %v2692_v39  ;;  %204 = vmatprep.mubr.f32.mxu0 %v3490_v1 }
  0x30   :  { %428 = vmatprep.subr.mxu0 %v2696_v40  ;;  %2016 = vmatpush3.msra.mxu1 %v2724_v48 }
  0x31   :  { %429 = vmatpush1.msra.mxu0 %v2701_v41  ;;  %2017 = vmatprep.subr.mxu1 %v3490_v1 }
  0x32   :  { %1821 = vmatmul.mubr.msk.f32.gmra.mxu0 %vm63_vm1, %v59_v43  ;;  %430 = vmatprep.subr.mxu0 %v2710_v44 }
  0x33   :  { %431 = vmatpush1.msra.mxu0 %v2713_v45  ;;  %466 = vmatprep.mubr.f32.mxu0 %v3490_v1 }
  0x34   :  { %432 = vmatprep.subr.mxu0 %v2717_v46  ;;  %2018 = vmatpush3.msra.mxu1 %v2735_v50 }
  0x35   :  { %433 = vmatpush1.msra.mxu0 %v2722_v47  ;;  %2000 = vmatprep.mubr.msk.f32.mxu1 %vm63_vm1, %v2597_v14 }
  0x36   :  { %467 = vmatmul.mubr.f32.vlgmr.msra.gmra.mxu0 %v2731_v49  ;;  %2019 = vmatprep.subr.mxu1 %v3490_v1 }
  0x37   :  { %2001 = vmatmul.mubr.msk.f32.gmra.mxu1 %vm63_vm1, %v2617_v19  ;;  %571 = vmatprep.subr.mxu0 %v2563_v5 }
  0x38   :  { %2020 = vmatpush3.msra.mxu1 %v2741_v51  ;;  %2003 = vmatprep.mubr.msk.f32.mxu1 %vm63_vm1, %v2641_v25 }
  0x39   :  { %2021 = vmatprep.subr.mxu1 %v3490_v1  ;;  %572 = vmatpush1.msra.mxu0 %v2565_v6 }
  0x3a   :  { %2022 = vmatpush3.msra.mxu1 %v2747_v52  ;;  %573 = vmatprep.subr.mxu0 %v2569_v7 }
  0x3b   :  { %2023 = vmatprep.subr.mxu1 %v3490_v1  ;;  %2004 = vmatmul.mubr.msk.f32.gmra.mxu1 %vm63_vm1, %v2665_v31 }
  0x3c   :  { %2024 = vmatpush3.msra.mxu1 %v2755_v53  ;;  %2006 = vmatprep.mubr.msk.f32.mxu1 %vm63_vm1, %v58_v37 }
  0x3d   :  { %2025 = vmatprep.subr.mxu1 %v3490_v1  ;;  %574 = vmatpush1.msra.mxu0 %v2573_v8 }
  0x3e   :  { %2026 = vmatpush3.msra.mxu1 %v2761_v54  ;;  %575 = vmatprep.subr.mxu0 %v2580_v10 }
  0x3f   :  { %2027 = vmatprep.subr.mxu1 %v3490_v1  ;;  %2007 = vmatmul.mubr.msk.f32.gmra.mxu1 %vm63_vm1, %v59_v43 }
  0x40   :  { %2028 = vmatpush3.msra.mxu1 %v2768_v55  ;;  %2041 = vmatprep.mubr.msk.f32.mxu1 %vm2497_vm2, %v3490_v1 }
  0x41   :  { %2029 = vmatprep.subr.mxu1 %v3490_v1  ;;  %576 = vmatpush1.msra.mxu0 %v2583_v11 }
  0x42   :  { %2030 = vmatpush3.msra.mxu1 %v2774_v56  ;;  %577 = vmatprep.subr.mxu0 %v2586_v12 }
  0x43   :  { %2031 = vmatprep.subr.mxu1 %v3490_v1  ;;  %578 = vmatpush1.msra.mxu0 %v2590_v13 }
  0x44   :  { %2032 = vmatpush3.msra.mxu1 %v2781_v57  ;;  %579 = vmatprep.subr.mxu0 %v2599_v15 }
  0x45   :  { %2033 = vmatprep.subr.mxu1 %v3490_v1  ;;  %580 = vmatpush1.msra.mxu0 %v2602_v16 }
  0x46   :  { %2034 = vmatpush3.msra.mxu1 %v2787_v58  ;;  %581 = vmatprep.subr.mxu0 %v2605_v17 }
  0x47   :  { %2035 = vmatprep.subr.mxu1 %v3490_v1  ;;  %582 = vmatpush1.msra.mxu0 %v2610_v18 }
  0x48   :  { %2036 = vmatpush3.msra.mxu1 %v2793_v59  ;;  %583 = vmatprep.subr.mxu0 %v2619_v20 }
  0x49   :  { %2037 = vmatprep.subr.mxu1 %v3490_v1  ;;  %584 = vmatpush1.msra.mxu0 %v2622_v21 }
  0x4a   :  { %2038 = vmatpush3.msra.mxu1 %v2799_v60  ;;  %585 = vmatprep.subr.mxu0 %v2628_v23 }
  0x4b   :  { %2039 = vmatprep.subr.mxu1 %v3490_v1  ;;  %586 = vmatpush1.msra.mxu0 %v2634_v24 }
  0x4c   :  { %2040 = vmatpush3.msra.mxu1 %v2805_v61  ;;  %587 = vmatprep.subr.mxu0 %v2643_v26 }
  0x4d   :  { %2042 = vmatmul.mubr.f32.vlgmr.msra.gmra.mxu1 %v2731_v49  ;;  %2044 = vmatprep.subr.mxu1 %v3490_v1 }
  0x4e   :  { %2045 = vmatpush3.msra.mxu1 %v2658_v30  ;;  %588 = vmatpush1.msra.mxu0 %v2646_v27 }
  0x4f   :  { %2046 = vmatprep.subr.mxu1 %v3490_v1  ;;  %589 = vmatprep.subr.mxu0 %v2650_v28 }
  0x50   :  { %2047 = vmatpush3.msra.mxu1 %v2682_v36  ;;  %590 = vmatpush1.msra.mxu0 %v2656_v29 }
  0x51   :  { %2048 = vmatprep.subr.mxu1 %v3490_v1  ;;  %591 = vmatprep.subr.mxu0 %v2667_v32 }
  0x52   :  { %2049 = vmatpush3.msra.mxu1 %v2703_v42  ;;  %592 = vmatpush1.msra.mxu0 %v2670_v33 }
  0x53   :  { %2050 = vmatprep.subr.mxu1 %v3490_v1  ;;  %593 = vmatprep.subr.mxu0 %v2674_v34 }
  0x54   :  { %2051 = vmatpush3.msra.mxu1 %v2724_v48  ;;  %594 = vmatpush1.msra.mxu0 %v2680_v35 }
  0x55   :  { %2052 = vmatprep.subr.mxu1 %v3490_v1  ;;  %595 = vmatprep.subr.mxu0 %v2689_v38 }
  0x56   :  { %2053 = vmatpush3.msra.mxu1 %v2735_v50  ;;  %596 = vmatpush1.msra.mxu0 %v2692_v39 }
  0x57   :  { %2054 = vmatprep.subr.mxu1 %v3490_v1  ;;  %597 = vmatprep.subr.mxu0 %v2696_v40 }
  0x58   :  { %2055 = vmatpush3.msra.mxu1 %v2741_v51  ;;  %598 = vmatpush1.msra.mxu0 %v2701_v41 }
  0x59   :  { %2056 = vmatprep.subr.mxu1 %v3490_v1  ;;  %599 = vmatprep.subr.mxu0 %v2710_v44 }
  0x5a   :  { %2057 = vmatpush3.msra.mxu1 %v2747_v52  ;;  %600 = vmatpush1.msra.mxu0 %v2713_v45 }
  0x5b   :  { %2058 = vmatprep.subr.mxu1 %v3490_v1  ;;  %601 = vmatprep.subr.mxu0 %v2717_v46 }
  0x5c   :  { %2059 = vmatpush3.msra.mxu1 %v2755_v53  ;;  %602 = vmatpush1.msra.mxu0 %v2722_v47 }
  0x5d   :  { %2060 = vmatprep.subr.mxu1 %v3490_v1  ;;  %635 = vmatprep.mubr.f32.mxu0 %v3490_v1 }
  0x5e   :  { %2061 = vmatpush3.msra.mxu1 %v2761_v54  ;;  %2076 = vmatprep.mubr.msk.f32.mxu1 %vm2497_vm2, %v3490_v1 }
  0x5f   :  { %2062 = vmatprep.subr.mxu1 %v3490_v1  ;;  %740 = vmatprep.subr.mxu0 %v2563_v5 }
  0x60   :  { %2063 = vmatpush3.msra.mxu1 %v2768_v55 }
  0x61   :  { %2064 = vmatprep.subr.mxu1 %v3490_v1 }
  0x62   :  { %2065 = vmatpush3.msra.mxu1 %v2774_v56 }
  0x63   :  { %2066 = vmatprep.subr.mxu1 %v3490_v1 }
  0x64   :  { %2067 = vmatpush3.msra.mxu1 %v2781_v57 }
  0x65   :  { %2068 = vmatprep.subr.mxu1 %v3490_v1 }
  0x66   :  { %2069 = vmatpush3.msra.mxu1 %v2787_v58 }
  0x67   :  { %2070 = vmatprep.subr.mxu1 %v3490_v1 }
  0x68   :  { %2071 = vmatpush3.msra.mxu1 %v2793_v59 }
  0x69   :  { %2072 = vmatprep.subr.mxu1 %v3490_v1 }
  0x6a   :  { %2073 = vmatpush3.msra.mxu1 %v2799_v60 }
  0x6b   :  { %2074 = vmatprep.subr.mxu1 %v3490_v1 }
  0x6c   :  { %2075 = vmatpush3.msra.mxu1 %v2805_v61 }
  0x6d   :  { %2079 = vmatprep.subr.mxu1 %v3490_v1 }
  0xd5   :  { %v164_v62 = vpop.f32.mrf.mxu0 }
  0xd7   :  { %v166_v63 = vpop.f32.mrf.mxu0 }
  0xda   :  { %v2868_v0 = vpop.f32.mrf.mxu0 }
  0xdb   :  { %3511 = vst [vmem:[#allocation18_spill] sm:$0xff] %v2868_v0 }
  0xdc   :  { %v2870_v2 = vpop.f32.mrf.mxu0 }
  0xdd   :  { %3512 = vst [vmem:[#allocation19_spill] sm:$0xff] %v2870_v2 }
  0xde   :  { %v2872_v3 = vpop.f32.mrf.mxu0 }
  0xdf   :  { %3513 = vst [vmem:[#allocation20_spill] sm:$0xff] %v2872_v3 }
  0xe0   :  { %v2874_v4 = vpop.f32.mrf.mxu0 }
  0xe1   :  { %3514 = vst [vmem:[#allocation21_spill] sm:$0xff] %v2874_v4  ;;  %v2894_v3 = vpop.f32.mrf.mxu1 }
  0xe2   :  { %v2876_v9 = vpop.f32.mrf.mxu0  ;;  %3524 = vst [vmem:[#allocation31_spill] sm:$0xff] %v2894_v3 }
  0xe3   :  { %3515 = vst [vmem:[#allocation22_spill] sm:$0xff] %v2876_v9 }
  0xe4   :  { %v2878_v14 = vpop.f32.mrf.mxu0 }
  0xe5   :  { %3516 = vst [vmem:[#allocation23_spill] sm:$0xff] %v2878_v14  ;;  %v277_v14 = vpop.f32.mrf.mxu1 }
  0xe6   :  { %v2880_v19 = vpop.f32.mrf.mxu0 }
  0xe7   :  { %3517 = vst [vmem:[#allocation24_spill] sm:$0xff] %v2880_v19 }
  0xe8   :  { %v2882_v22 = vpop.f32.mrf.mxu0 }
  0xe9   :  { %3518 = vst [vmem:[#allocation25_spill] sm:$0xff] %v2882_v22 }
  0xea   :  { %v2884_v25 = vpop.f32.mrf.mxu0 }
  0xeb   :  { %3519 = vst [vmem:[#allocation26_spill] sm:$0xff] %v2884_v25 }
  0xec   :  { %v2886_v31 = vpop.f32.mrf.mxu0 }
  0xed   :  { %3520 = vst [vmem:[#allocation27_spill] sm:$0xff] %v2886_v31 }
  0xee   :  { %v2888_v37 = vpop.f32.mrf.mxu0 }
  0xef   :  { %3521 = vst [vmem:[#allocation28_spill] sm:$0xff] %v2888_v37 }
  0xf0   :  { %v2890_v43 = vpop.f32.mrf.mxu0 }
  0xf1   :  { %3522 = vst [vmem:[#allocation29_spill] sm:$0xff] %v2890_v43 }
  0xf2   :  { %v2892_v1 = vpop.f32.mrf.mxu0 }
  0xf3   :  { %3523 = vst [vmem:[#allocation30_spill] sm:$0xff] %v2892_v1 }
  0xf4   :  { %v2896_v4 = vpop.f32.mrf.mxu0 }
  0xf5   :  { %3525 = vst [vmem:[#allocation32_spill] sm:$0xff] %v2896_v4 }
  0xf6   :  { %v468_v9 = vpop.f32.mrf.mxu0 }
  0xf7   :  { %v543_v2 = vadd.f32 %v468_v9, %v164_v62  ;;  %v2898_v19 = vpop.f32.mrf.mxu1 }
  0xf8   :  { %3526 = vst [vmem:[#allocation33_spill] sm:$0xff] %v2898_v19  ;;  %v470_v0 = vpop.f32.mrf.mxu0 }
  0xf9   :  { %v1832_v22 = vmul.f32 -1.442695, %v543_v2  ;;  %v2900_v25 = vpop.f32.mrf.mxu1  ;;  %v550_v31 = vadd.f32 %v470_v0, %v166_v63  ;;  %v2913_v63 = vld [vmem:[%s3485_s4] ss:$0 sm:$0xff] }
  0xfa   :  { %3527 = vst [vmem:[#allocation34_spill] sm:$0xff] %v2900_v25 }
  0xfb   :  { %2298 = vpow2.f32 %v1832_v22  ;;  %v2902_v37 = vpop.f32.mrf.mxu1  ;;  %v1833_v43 = vmul.f32 -1.442695, %v550_v31 }
  0xfc   :  { %3528 = vst [vmem:[#allocation35_spill] sm:$0xff] %v2902_v37 }
  0xfd   :  { %v2904_v5 = vpop.f32.mrf.mxu1  ;;  %2300 = vpow2.f32 %v1833_v43 }
  0xfe   :  { %3529 = vst [vmem:[#allocation36_spill] sm:$0xff] %v2904_v5 }
  0xff   :  { %v2906_v1 = vpop.f32.mrf.mxu1 }
 0x100   :  { %3530 = vst [vmem:[#allocation37_spill] sm:$0xff] %v2906_v1 }
 0x101   :  { %v2908_v61 = vpop.f32.mrf.mxu1 }
 0x102   :  { %3531 = vst [vmem:[#allocation38_spill] sm:$0xff] %v2908_v61 }
 0x108   :  { %v2299_v4 = vpop.eup %2298 }
 0x109   :  { %v547_v3 = vadd.f32 1.0, %v2299_v4 }
 0x10a   :  { %v2301_v9 = vpop.eup %2300 }
 0x10b   :  { %2302 = vrcp.f32 %v547_v3  ;;  %v554_v0 = vadd.f32 1.0, %v2301_v9 }
 0x10d   :  { %v539_v62 = vpop.f32.mrf.mxu1  ;;  %2304 = vrcp.f32 %v554_v0 }
 0x10e   :  { %v557_v22 = vadd.f32 %v2913_v63, %v539_v62  ;;  %v3535_v62 = vld [vmem:[#allocation18_spill] sm:$0xff] }
 0x10f   :  { %v2043_v2 = vpop.f32.mrf.mxu1 }
 0x118   :  { %v2303_v31 = vpop.eup %2302 }
 0x119   :  { %v558_v43 = vmul.f32 %v2303_v31, %v557_v22 }
 0x11a   :  { %v2305_v4 = vpop.eup %2304 }
 0x11b   :  { %v559_v1 = vadd.f32 %v558_v43, %v277_v14  ;;  %v561_v37 = vsub.f32 1.0, %v2305_v4  ;;  %v563_v2 = vmul.f32 %v2305_v4, %v2731_v49  ;;  %v3532_v14 = vmov 0.0   ;;  %v3534_v49 = vld [vmem:[#allocation13_spill] sm:$0xff]  ;;  %v3536_v43 = vld [vmem:[#allocation19_spill] sm:$0xff] }
 0x11d   :  { %2306 = vtanh.f32 %v559_v1  ;;  %v3533_v1 = vld [vmem:[#allocation17_spill] sm:$0xff] }
 0x12a   :  { %v2307_v61 = vpop.eup %2306 }
 0x12b   :  { %v562_v3 = vmul.f32 %v2307_v61, %v561_v37 }
 0x12d   :  { %v2917_v5 = vadd.f32 %v563_v2, %v562_v3 }
 0x12f   :  { %636 = vmatmul.mubr.f32.vlgmr.msra.gmra.mxu0 %v2917_v5  ;;  %2077 = vmatmul.mubr.f32.vlgmr.msra.gmra.mxu1 %v2917_v5 }
 0x130   :  { %741 = vmatpush1.msra.mxu0 %v2565_v6  ;;  %2080 = vmatpush3.msra.mxu1 %v2658_v30 }
 0x131   :  { %742 = vmatprep.subr.mxu0 %v2569_v7  ;;  %2081 = vmatprep.subr.mxu1 %v3532_v14 }
 0x132   :  { %743 = vmatpush1.msra.mxu0 %v2573_v8  ;;  %2082 = vmatpush3.msra.mxu1 %v2682_v36 }
 0x133   :  { %744 = vmatprep.subr.mxu0 %v2580_v10  ;;  %2083 = vmatprep.subr.mxu1 %v3532_v14 }
 0x134   :  { %745 = vmatpush1.msra.mxu0 %v2583_v11  ;;  %2084 = vmatpush3.msra.mxu1 %v2703_v42 }
 0x135   :  { %746 = vmatprep.subr.mxu0 %v2586_v12  ;;  %2085 = vmatprep.subr.mxu1 %v3532_v14 }
 0x136   :  { %747 = vmatpush1.msra.mxu0 %v2590_v13  ;;  %2086 = vmatpush3.msra.mxu1 %v2724_v48 }
 0x137   :  { %748 = vmatprep.subr.mxu0 %v2599_v15  ;;  %2087 = vmatprep.subr.mxu1 %v3532_v14 }
 0x138   :  { %749 = vmatpush1.msra.mxu0 %v2602_v16  ;;  %2088 = vmatpush3.msra.mxu1 %v2735_v50 }
 0x139   :  { %750 = vmatprep.subr.mxu0 %v2605_v17  ;;  %2089 = vmatprep.subr.mxu1 %v3532_v14 }
 0x13a   :  { %751 = vmatpush1.msra.mxu0 %v2610_v18  ;;  %2090 = vmatpush3.msra.mxu1 %v2741_v51 }
 0x13b   :  { %752 = vmatprep.subr.mxu0 %v2619_v20  ;;  %2091 = vmatprep.subr.mxu1 %v3532_v14 }
 0x13c   :  { %753 = vmatpush1.msra.mxu0 %v2622_v21  ;;  %2092 = vmatpush3.msra.mxu1 %v2747_v52 }
 0x13d   :  { %754 = vmatprep.subr.mxu0 %v2628_v23  ;;  %2093 = vmatprep.subr.mxu1 %v3532_v14 }
 0x13e   :  { %755 = vmatpush1.msra.mxu0 %v2634_v24  ;;  %2094 = vmatpush3.msra.mxu1 %v2755_v53 }
 0x13f   :  { %756 = vmatprep.subr.mxu0 %v2643_v26  ;;  %2095 = vmatprep.subr.mxu1 %v3532_v14 }
 0x140   :  { %757 = vmatpush1.msra.mxu0 %v2646_v27  ;;  %2096 = vmatpush3.msra.mxu1 %v2761_v54 }
 0x141   :  { %758 = vmatprep.subr.mxu0 %v2650_v28  ;;  %2097 = vmatprep.subr.mxu1 %v3532_v14 }
 0x142   :  { %759 = vmatpush1.msra.mxu0 %v2656_v29  ;;  %2098 = vmatpush3.msra.mxu1 %v2768_v55 }
 0x143   :  { %760 = vmatprep.subr.mxu0 %v2667_v32  ;;  %2099 = vmatprep.subr.mxu1 %v3532_v14 }
 0x144   :  { %761 = vmatpush1.msra.mxu0 %v2670_v33  ;;  %2100 = vmatpush3.msra.mxu1 %v2774_v56 }
 0x145   :  { %762 = vmatprep.subr.mxu0 %v2674_v34  ;;  %2101 = vmatprep.subr.mxu1 %v3532_v14 }
 0x146   :  { %763 = vmatpush1.msra.mxu0 %v2680_v35  ;;  %2102 = vmatpush3.msra.mxu1 %v2781_v57 }
 0x147   :  { %764 = vmatprep.subr.mxu0 %v2689_v38  ;;  %2103 = vmatprep.subr.mxu1 %v3532_v14 }
 0x148   :  { %765 = vmatpush1.msra.mxu0 %v2692_v39  ;;  %2104 = vmatpush3.msra.mxu1 %v2787_v58 }
 0x149   :  { %766 = vmatprep.subr.mxu0 %v2696_v40  ;;  %2105 = vmatprep.subr.mxu1 %v3532_v14 }
 0x14a   :  { %767 = vmatpush1.msra.mxu0 %v2701_v41  ;;  %2106 = vmatpush3.msra.mxu1 %v2793_v59 }
 0x14b   :  { %768 = vmatprep.subr.mxu0 %v2710_v44  ;;  %2107 = vmatprep.subr.mxu1 %v3532_v14 }
 0x14c   :  { %769 = vmatpush1.msra.mxu0 %v2713_v45  ;;  %2108 = vmatpush3.msra.mxu1 %v2799_v60  ;;  %v3537_v60 = vld [vmem:[#allocation31_spill] sm:$0xff] }
 0x14d   :  { %770 = vmatprep.subr.mxu0 %v2717_v46  ;;  %2109 = vmatprep.subr.mxu1 %v3532_v14 }
 0x14e   :  { %771 = vmatpush1.msra.mxu0 %v2722_v47  ;;  %804 = vmatprep.mubr.f32.mxu0 %v3532_v14 }
 0x14f   :  { %2110 = vmatpush3.msra.mxu1 %v3533_v1  ;;  %2111 = vmatprep.mubr.msk.f32.mxu1 %vm2497_vm2, %v3532_v14 }
 0x150   :  { %909 = vmatprep.subr.mxu0 %v3534_v49  ;;  %2114 = vmatprep.subr.mxu1 %v3532_v14 }
 0x1ef   :  { %v637_v61 = vpop.f32.mrf.mxu0  ;;  %v708_v37 = vpop.f32.mrf.mxu1 }
 0x1f0   :  { %v712_v9 = vadd.f32 %v637_v61, %v3535_v62  ;;  %v726_v49 = vadd.f32 %v2913_v63, %v708_v37 }
 0x1f1   :  { %v2078_v0 = vpop.f32.mrf.mxu1  ;;  %v639_v31 = vpop.f32.mrf.mxu0 }
 0x1f2   :  { %v1834_v22 = vmul.f32 -1.442695, %v712_v9  ;;  %v719_v4 = vadd.f32 %v639_v31, %v3536_v43 }
 0x1f4   :  { %2308 = vpow2.f32 %v1834_v22  ;;  %v1835_v3 = vmul.f32 -1.442695, %v719_v4 }
 0x1f6   :  { %2310 = vpow2.f32 %v1835_v3 }
 0x201   :  { %v2309_v2 = vpop.eup %2308 }
 0x202   :  { %v716_v19 = vadd.f32 1.0, %v2309_v2 }
 0x203   :  { %v2311_v25 = vpop.eup %2310 }
 0x204   :  { %2312 = vrcp.f32 %v716_v19  ;;  %v723_v1 = vadd.f32 1.0, %v2311_v25  ;;  %v3542_v19 = vld [vmem:[#allocation13_spill] sm:$0xff] }
 0x206   :  { %2314 = vrcp.f32 %v723_v1 }
 0x211   :  { %v2313_v47 = vpop.eup %2312 }
 0x212   :  { %v727_v46 = vmul.f32 %v2313_v47, %v726_v49  ;;  %v3540_v47 = vld [vmem:[#allocation15_spill] sm:$0xff]  ;;  %v3543_v49 = vld [vmem:[#allocation20_spill] sm:$0xff] }
 0x213   :  { %v2315_v62 = vpop.eup %2314 }
 0x214   :  { %v728_v61 = vadd.f32 %v3537_v60, %v727_v46  ;;  %v730_v9 = vsub.f32 1.0, %v2315_v62  ;;  %v732_v31 = vmul.f32 %v2315_v62, %v2917_v5  ;;  %v3538_v5 = vld [vmem:[#allocation16_spill] sm:$0xff]  ;;  %v3539_v46 = vld [vmem:[#allocation14_spill] sm:$0xff]  ;;  %v3541_v60 = vld [vmem:[#allocation17_spill] sm:$0xff] }
 0x216   :  { %2316 = vtanh.f32 %v728_v61  ;;  %v3544_v61 = vld [vmem:[#allocation21_spill] sm:$0xff] }
 0x223   :  { %v2317_v0 = vpop.eup %2316 }
 0x224   :  { %v731_v22 = vmul.f32 %v2317_v0, %v730_v9 }
 0x226   :  { %v2993_v43 = vadd.f32 %v732_v31, %v731_v22 }
 0x228   :  { %805 = vmatmul.mubr.f32.vlgmr.msra.gmra.mxu0 %v2993_v43  ;;  %2112 = vmatmul.mubr.f32.vlgmr.msra.gmra.mxu1 %v2993_v43 }
 0x229   :  { %910 = vmatpush1.msra.mxu0 %v2565_v6  ;;  %2115 = vmatpush3.msra.mxu1 %v2658_v30 }
 0x22a   :  { %911 = vmatprep.subr.mxu0 %v2569_v7  ;;  %2116 = vmatprep.subr.mxu1 %v3532_v14 }
 0x22b   :  { %912 = vmatpush1.msra.mxu0 %v2573_v8  ;;  %2117 = vmatpush3.msra.mxu1 %v2682_v36 }
 0x22c   :  { %913 = vmatprep.subr.mxu0 %v2580_v10  ;;  %2118 = vmatprep.subr.mxu1 %v3532_v14 }
 0x22d   :  { %914 = vmatpush1.msra.mxu0 %v2583_v11  ;;  %2119 = vmatpush3.msra.mxu1 %v2703_v42 }
 0x22e   :  { %915 = vmatprep.subr.mxu0 %v2586_v12  ;;  %2120 = vmatprep.subr.mxu1 %v3532_v14 }
 0x22f   :  { %916 = vmatpush1.msra.mxu0 %v2590_v13  ;;  %2121 = vmatpush3.msra.mxu1 %v2724_v48 }
 0x230   :  { %917 = vmatprep.subr.mxu0 %v2599_v15  ;;  %2122 = vmatprep.subr.mxu1 %v3532_v14 }
 0x231   :  { %918 = vmatpush1.msra.mxu0 %v2602_v16  ;;  %2123 = vmatpush3.msra.mxu1 %v2735_v50 }
 0x232   :  { %919 = vmatprep.subr.mxu0 %v2605_v17  ;;  %2124 = vmatprep.subr.mxu1 %v3532_v14 }
 0x233   :  { %920 = vmatpush1.msra.mxu0 %v2610_v18  ;;  %2125 = vmatpush3.msra.mxu1 %v2741_v51 }
 0x234   :  { %921 = vmatprep.subr.mxu0 %v2619_v20  ;;  %2126 = vmatprep.subr.mxu1 %v3532_v14 }
 0x235   :  { %922 = vmatpush1.msra.mxu0 %v2622_v21  ;;  %2127 = vmatpush3.msra.mxu1 %v2747_v52 }
 0x236   :  { %923 = vmatprep.subr.mxu0 %v2628_v23  ;;  %2128 = vmatprep.subr.mxu1 %v3532_v14 }
 0x237   :  { %924 = vmatpush1.msra.mxu0 %v2634_v24  ;;  %2129 = vmatpush3.msra.mxu1 %v2755_v53 }
 0x238   :  { %925 = vmatprep.subr.mxu0 %v2643_v26  ;;  %2130 = vmatprep.subr.mxu1 %v3532_v14 }
 0x239   :  { %926 = vmatpush1.msra.mxu0 %v2646_v27  ;;  %2131 = vmatpush3.msra.mxu1 %v2761_v54 }
 0x23a   :  { %927 = vmatprep.subr.mxu0 %v2650_v28  ;;  %2132 = vmatprep.subr.mxu1 %v3532_v14 }
 0x23b   :  { %928 = vmatpush1.msra.mxu0 %v2656_v29  ;;  %2133 = vmatpush3.msra.mxu1 %v2768_v55 }
 0x23c   :  { %929 = vmatprep.subr.mxu0 %v2667_v32  ;;  %2134 = vmatprep.subr.mxu1 %v3532_v14 }
 0x23d   :  { %930 = vmatpush1.msra.mxu0 %v2670_v33  ;;  %2135 = vmatpush3.msra.mxu1 %v2774_v56 }
 0x23e   :  { %931 = vmatprep.subr.mxu0 %v2674_v34  ;;  %2136 = vmatprep.subr.mxu1 %v3532_v14 }
 0x23f   :  { %932 = vmatpush1.msra.mxu0 %v2680_v35  ;;  %2137 = vmatpush3.msra.mxu1 %v2781_v57 }
 0x240   :  { %933 = vmatprep.subr.mxu0 %v2689_v38  ;;  %2138 = vmatprep.subr.mxu1 %v3532_v14 }
 0x241   :  { %934 = vmatpush1.msra.mxu0 %v2692_v39  ;;  %2139 = vmatpush3.msra.mxu1 %v2787_v58 }
 0x242   :  { %935 = vmatprep.subr.mxu0 %v2696_v40  ;;  %2140 = vmatprep.subr.mxu1 %v3532_v14 }
 0x243   :  { %936 = vmatpush1.msra.mxu0 %v2701_v41  ;;  %2141 = vmatpush3.msra.mxu1 %v2793_v59 }
 0x244   :  { %937 = vmatprep.subr.mxu0 %v2710_v44  ;;  %2142 = vmatprep.subr.mxu1 %v3532_v14 }
 0x245   :  { %938 = vmatpush1.msra.mxu0 %v2713_v45  ;;  %2143 = vmatpush3.msra.mxu1 %v3538_v5  ;;  %v3545_v5 = vld [vmem:[#allocation34_spill] sm:$0xff] }
 0x246   :  { %939 = vmatprep.subr.mxu0 %v3539_v46  ;;  %2144 = vmatprep.subr.mxu1 %v3532_v14 }
 0x247   :  { %940 = vmatpush1.msra.mxu0 %v3540_v47  ;;  %973 = vmatprep.mubr.f32.mxu0 %v3532_v14 }
 0x248   :  { %2145 = vmatpush3.msra.mxu1 %v3541_v60  ;;  %2146 = vmatprep.mubr.msk.f32.mxu1 %vm2497_vm2, %v3532_v14 }
 0x249   :  { %1078 = vmatprep.subr.mxu0 %v3542_v19  ;;  %2149 = vmatprep.subr.mxu1 %v3532_v14 }
 0x2e8   :  { %v806_v25 = vpop.f32.mrf.mxu0  ;;  %v877_v1 = vpop.f32.mrf.mxu1 }
 0x2e9   :  { %v881_v37 = vadd.f32 %v806_v25, %v3543_v49  ;;  %v895_v19 = vadd.f32 %v2913_v63, %v877_v1  ;;  %v3167_v1 = vld [vmem:[#allocation4 + $0x138] sm:$0xff] }
 0x2ea   :  { %v2113_v4 = vpop.f32.mrf.mxu1  ;;  %v808_v2 = vpop.f32.mrf.mxu0 }
 0x2eb   :  { %v1836_v3 = vmul.f32 -1.442695, %v881_v37  ;;  %v888_v62 = vadd.f32 %v808_v2, %v3544_v61 }
 0x2ed   :  { %2318 = vpow2.f32 %v1836_v3  ;;  %v1837_v9 = vmul.f32 -1.442695, %v888_v62  ;;  %v3175_v62 = vld [vmem:[#allocation4 + $0x120] sm:$0xff] }
 0x2ef   :  { %2320 = vpow2.f32 %v1837_v9  ;;  %v3183_v9 = vld [vmem:[#allocation4 + $0x108] sm:$0xff] }
 0x2fa   :  { %v2319_v0 = vpop.eup %2318 }
 0x2fb   :  { %v885_v22 = vadd.f32 1.0, %v2319_v0  ;;  %v3191_v0 = vld [vmem:[#allocation4 + $0xf0] sm:$0xff] }
 0x2fc   :  { %v2321_v31 = vpop.eup %2320 }
 0x2fd   :  { %2322 = vrcp.f32 %v885_v22  ;;  %v892_v60 = vadd.f32 1.0, %v2321_v31  ;;  %v3199_v22 = vld [vmem:[#allocation4 + $0xd8] sm:$0xff]  ;;  %v3207_v31 = vld [vmem:[#allocation4 + $0xc0] sm:$0xff] }
 0x2ff   :  { %2324 = vrcp.f32 %v892_v60  ;;  %v3163_v60 = vld [vmem:[#allocation4 + $0x140] sm:$0xff] }
 0x30a   :  { %v2323_v47 = vpop.eup %2322 }
 0x30b   :  { %v896_v46 = vmul.f32 %v2323_v47, %v895_v19  ;;  %v3159_v47 = vld [vmem:[#allocation4 + $0x150] sm:$0xff]  ;;  %v3215_v19 = vld [vmem:[#allocation4 + $0xa8] sm:$0xff] }
 0x30c   :  { %v2325_v49 = vpop.eup %2324 }
 0x30d   :  { %v897_v25 = vadd.f32 %v896_v46, %v3545_v5  ;;  %v899_v37 = vsub.f32 1.0, %v2325_v49  ;;  %v901_v2 = vmul.f32 %v2325_v49, %v2993_v43  ;;  %v3151_v5 = vld [vmem:[#allocation4 + $0x168] sm:$0xff]  ;;  %v3155_v46 = vld [vmem:[#allocation4 + $0x158] sm:$0xff] }
 0x30e   :  { %v3231_v49 = vld [vmem:[#allocation4 + $0x78] sm:$0xff] }
 0x30f   :  { %2326 = vtanh.f32 %v897_v25  ;;  %v3223_v25 = vld [vmem:[#allocation4 + $0x90] sm:$0xff] }
 0x31c   :  { %v2327_v4 = vpop.eup %2326 }
 0x31d   :  { %v900_v3 = vmul.f32 %v2327_v4, %v899_v37  ;;  %v3239_v37 = vld [vmem:[#allocation4 + $0x60] sm:$0xff]  ;;  %v3247_v4 = vld [vmem:[#allocation4 + $0x48] sm:$0xff] }
 0x31f   :  { %v3069_v61 = vadd.f32 %v901_v2, %v900_v3  ;;  %v3255_v3 = vld [vmem:[#allocation4 + $0x30] sm:$0xff]  ;;  %v3263_v2 = vld [vmem:[#allocation4 + $0x18] sm:$0xff] }
 0x321   :  { %974 = vmatmul.mubr.f32.vlgmr.msra.gmra.mxu0 %v3069_v61  ;;  %2147 = vmatmul.mubr.f32.vlgmr.msra.gmra.mxu1 %v3069_v61 }
 0x322   :  { %1079 = vmatpush1.msra.mxu0 %v2565_v6  ;;  %2150 = vmatpush3.msra.mxu1 %v2658_v30  ;;  %v3546_v6 = vld [vmem:[#allocation16_spill] sm:$0xff] }
 0x323   :  { %1080 = vmatprep.subr.mxu0 %v2569_v7  ;;  %2151 = vmatprep.subr.mxu1 %v3532_v14  ;;  %v3547_v7 = vld [vmem:[#allocation14_spill] sm:$0xff] }
 0x324   :  { %1081 = vmatpush1.msra.mxu0 %v2573_v8  ;;  %2152 = vmatpush3.msra.mxu1 %v2682_v36  ;;  %v3548_v8 = vld [vmem:[#allocation15_spill] sm:$0xff] }
 0x325   :  { %1082 = vmatprep.subr.mxu0 %v2580_v10  ;;  %2153 = vmatprep.subr.mxu1 %v3532_v14  ;;  %v3549_v10 = vld [vmem:[#allocation17_spill] sm:$0xff] }
 0x326   :  { %1083 = vmatpush1.msra.mxu0 %v2583_v11  ;;  %2154 = vmatpush3.msra.mxu1 %v2703_v42  ;;  %v3138_v11 = vld [vmem:[#allocation4 + $0x170] sm:$0xff] }
 0x327   :  { %1084 = vmatprep.subr.mxu0 %v2586_v12  ;;  %2155 = vmatprep.subr.mxu1 %v3532_v14 }
 0x328   :  { %1085 = vmatpush1.msra.mxu0 %v2590_v13  ;;  %2156 = vmatpush3.msra.mxu1 %v2724_v48 }
 0x329   :  { %1086 = vmatprep.subr.mxu0 %v2599_v15  ;;  %2157 = vmatprep.subr.mxu1 %v3532_v14  ;;  %v3550_v15 = vld [vmem:[#allocation22_spill] sm:$0xff] }
 0x32a   :  { %1087 = vmatpush1.msra.mxu0 %v2602_v16  ;;  %2158 = vmatpush3.msra.mxu1 %v2735_v50 }
 0x32b   :  { %1088 = vmatprep.subr.mxu0 %v2605_v17  ;;  %2159 = vmatprep.subr.mxu1 %v3532_v14 }
 0x32c   :  { %1089 = vmatpush1.msra.mxu0 %v2610_v18  ;;  %2160 = vmatpush3.msra.mxu1 %v2741_v51 }
 0x32d   :  { %1090 = vmatprep.subr.mxu0 %v2619_v20  ;;  %2161 = vmatprep.subr.mxu1 %v3532_v14 }
 0x32e   :  { %1091 = vmatpush1.msra.mxu0 %v2622_v21  ;;  %2162 = vmatpush3.msra.mxu1 %v2747_v52  ;;  %v3551_v21 = vld [vmem:[#allocation23_spill] sm:$0xff] }
 0x32f   :  { %1092 = vmatprep.subr.mxu0 %v2628_v23  ;;  %2163 = vmatprep.subr.mxu1 %v3532_v14 }
 0x330   :  { %1093 = vmatpush1.msra.mxu0 %v2634_v24  ;;  %2164 = vmatpush3.msra.mxu1 %v2755_v53 }
 0x331   :  { %1094 = vmatprep.subr.mxu0 %v2643_v26  ;;  %2165 = vmatprep.subr.mxu1 %v3532_v14 }
 0x332   :  { %1095 = vmatpush1.msra.mxu0 %v2646_v27  ;;  %2166 = vmatpush3.msra.mxu1 %v2761_v54 }
 0x333   :  { %1096 = vmatprep.subr.mxu0 %v2650_v28  ;;  %2167 = vmatprep.subr.mxu1 %v3532_v14 }
 0x334   :  { %1097 = vmatpush1.msra.mxu0 %v2656_v29  ;;  %2168 = vmatpush3.msra.mxu1 %v2768_v55 }
 0x335   :  { %1098 = vmatprep.subr.mxu0 %v2667_v32  ;;  %2169 = vmatprep.subr.mxu1 %v3532_v14 }
 0x336   :  { %1099 = vmatpush1.msra.mxu0 %v2670_v33  ;;  %2170 = vmatpush3.msra.mxu1 %v2774_v56 }
 0x337   :  { %1100 = vmatprep.subr.mxu0 %v2674_v34  ;;  %2171 = vmatprep.subr.mxu1 %v3532_v14 }
 0x338   :  { %1101 = vmatpush1.msra.mxu0 %v2680_v35  ;;  %2172 = vmatpush3.msra.mxu1 %v2781_v57  ;;  %v3552_v35 = vld [vmem:[#allocation33_spill] sm:$0xff] }
 0x339   :  { %1102 = vmatprep.subr.mxu0 %v2689_v38  ;;  %2173 = vmatprep.subr.mxu1 %v3532_v14 }
 0x33a   :  { %1103 = vmatpush1.msra.mxu0 %v2692_v39  ;;  %2174 = vmatpush3.msra.mxu1 %v2787_v58 }
 0x33b   :  { %1104 = vmatprep.subr.mxu0 %v2696_v40  ;;  %2175 = vmatprep.subr.mxu1 %v3532_v14 }
 0x33c   :  { %1105 = vmatpush1.msra.mxu0 %v2701_v41  ;;  %2176 = vmatpush3.msra.mxu1 %v2793_v59 }
 0x33d   :  { %1106 = vmatprep.subr.mxu0 %v2710_v44  ;;  %2177 = vmatprep.subr.mxu1 %v3532_v14 }
 0x33e   :  { %1107 = vmatpush1.msra.mxu0 %v2713_v45  ;;  %2178 = vmatpush3.msra.mxu1 %v3546_v6 }
 0x33f   :  { %1108 = vmatprep.subr.mxu0 %v3547_v7  ;;  %2179 = vmatprep.subr.mxu1 %v3532_v14  ;;  %v3555_v7 = vld [vmem:[#allocation24_spill] sm:$0xff] }
 0x340   :  { %1109 = vmatpush1.msra.mxu0 %v3548_v8  ;;  %1142 = vmatprep.mubr.f32.mxu0 %v3532_v14 }
 0x341   :  { %2180 = vmatpush3.msra.mxu1 %v3549_v10  ;;  %2181 = vmatprep.mubr.msk.f32.mxu1 %vm2497_vm2, %v3532_v14 }
 0x342   :  { %1247 = vmatprep.subr.mxu0 %v3138_v11  ;;  %2184 = vmatprep.subr.mxu1 %v3532_v14 }
 0x3e1   :  { %v975_v12 = vpop.f32.mrf.mxu0  ;;  %v1046_v13 = vpop.f32.mrf.mxu1 }
 0x3e2   :  { %v1050_v16 = vadd.f32 %v975_v12, %v3550_v15  ;;  %v1064_v32 = vadd.f32 %v2913_v63, %v1046_v13 }
 0x3e3   :  { %v2148_v17 = vpop.f32.mrf.mxu1  ;;  %v977_v20 = vpop.f32.mrf.mxu0 }
 0x3e4   :  { %v1838_v18 = vmul.f32 -1.442695, %v1050_v16  ;;  %v1057_v23 = vadd.f32 %v977_v20, %v3551_v21  ;;  %v3556_v16 = vld [vmem:[#allocation25_spill] sm:$0xff] }
 0x3e6   :  { %2328 = vpow2.f32 %v1838_v18  ;;  %v1839_v24 = vmul.f32 -1.442695, %v1057_v23 }
 0x3e8   :  { %2330 = vpow2.f32 %v1839_v24 }
 0x3f3   :  { %v2329_v26 = vpop.eup %2328 }
 0x3f4   :  { %v1054_v27 = vadd.f32 1.0, %v2329_v26 }
 0x3f5   :  { %v2331_v28 = vpop.eup %2330 }
 0x3f6   :  { %2332 = vrcp.f32 %v1054_v27  ;;  %v1061_v29 = vadd.f32 1.0, %v2331_v28  ;;  %v3557_v28 = vld [vmem:[#allocation36_spill] sm:$0xff] }
 0x3f8   :  { %2334 = vrcp.f32 %v1061_v29 }
 0x403   :  { %v2333_v33 = vpop.eup %2332 }
 0x404   :  { %v1065_v34 = vmul.f32 %v2333_v33, %v1064_v32 }
 0x405   :  { %v2335_v39 = vpop.eup %2334 }
 0x406   :  { %v1066_v38 = vadd.f32 %v3552_v35, %v1065_v34  ;;  %v1068_v40 = vsub.f32 1.0, %v2335_v39  ;;  %v1070_v45 = vmul.f32 %v2335_v39, %v3069_v61  ;;  %v3271_v61 = vld [vmem:[#allocation4] sm:$0xff] }
 0x407   :  { %3554 = vst [vmem:[#allocation19_spill] sm:$0xff] %v3271_v61 }
 0x408   :  { %2336 = vtanh.f32 %v1066_v38 }
 0x415   :  { %v2337_v41 = vpop.eup %2336 }
 0x416   :  { %v1069_v44 = vmul.f32 %v2337_v41, %v1068_v40  ;;  %v3290_v40 = vld [vmem:[#allocation4 + $0x178] sm:$0xff]  ;;  %v3296_v41 = vld [vmem:[#allocation4 + $0x160] sm:$0xff] }
 0x418   :  { %v3147_v43 = vadd.f32 %v1070_v45, %v1069_v44  ;;  %v3302_v44 = vld [vmem:[#allocation4 + $0x148] sm:$0xff]  ;;  %v3308_v45 = vld [vmem:[#allocation4 + $0x130] sm:$0xff] }
 0x41a   :  { %1143 = vmatmul.mubr.f32.vlgmr.msra.gmra.mxu0 %v3147_v43  ;;  %2182 = vmatmul.mubr.f32.vlgmr.msra.gmra.mxu1 %v3147_v43 }
 0x41b   :  { %1248 = vmatpush1.msra.mxu0 %v3151_v5  ;;  %2185 = vmatpush3.msra.mxu1 %v2658_v30  ;;  %v3171_v30 = vld [vmem:[#allocation4 + $0x128] sm:$0xff] }
 0x41c   :  { %1249 = vmatprep.subr.mxu0 %v3155_v46  ;;  %2186 = vmatprep.subr.mxu1 %v3532_v14 }
 0x41d   :  { %1250 = vmatpush1.msra.mxu0 %v3159_v47  ;;  %2187 = vmatpush3.msra.mxu1 %v2682_v36  ;;  %v3179_v36 = vld [vmem:[#allocation4 + $0x110] sm:$0xff] }
 0x41e   :  { %1251 = vmatprep.subr.mxu0 %v3163_v60  ;;  %2188 = vmatprep.subr.mxu1 %v3532_v14 }
 0x41f   :  { %1252 = vmatpush1.msra.mxu0 %v3167_v1  ;;  %2189 = vmatpush3.msra.mxu1 %v2703_v42  ;;  %v3187_v42 = vld [vmem:[#allocation4 + $0xf8] sm:$0xff] }
 0x420   :  { %1253 = vmatprep.subr.mxu0 %v3171_v30  ;;  %2190 = vmatprep.subr.mxu1 %v3532_v14 }
 0x421   :  { %1254 = vmatpush1.msra.mxu0 %v3175_v62  ;;  %2191 = vmatpush3.msra.mxu1 %v2724_v48  ;;  %v3195_v48 = vld [vmem:[#allocation4 + $0xe0] sm:$0xff] }
 0x422   :  { %1255 = vmatprep.subr.mxu0 %v3179_v36  ;;  %2192 = vmatprep.subr.mxu1 %v3532_v14 }
 0x423   :  { %1256 = vmatpush1.msra.mxu0 %v3183_v9  ;;  %2193 = vmatpush3.msra.mxu1 %v2735_v50  ;;  %v3203_v50 = vld [vmem:[#allocation4 + $0xc8] sm:$0xff] }
 0x424   :  { %1257 = vmatprep.subr.mxu0 %v3187_v42  ;;  %2194 = vmatprep.subr.mxu1 %v3532_v14 }
 0x425   :  { %1258 = vmatpush1.msra.mxu0 %v3191_v0  ;;  %2195 = vmatpush3.msra.mxu1 %v2741_v51  ;;  %v3211_v51 = vld [vmem:[#allocation4 + $0xb0] sm:$0xff] }
 0x426   :  { %1259 = vmatprep.subr.mxu0 %v3195_v48  ;;  %2196 = vmatprep.subr.mxu1 %v3532_v14 }
 0x427   :  { %1260 = vmatpush1.msra.mxu0 %v3199_v22  ;;  %2197 = vmatpush3.msra.mxu1 %v2747_v52  ;;  %v3219_v52 = vld [vmem:[#allocation4 + $0x98] sm:$0xff] }
 0x428   :  { %1261 = vmatprep.subr.mxu0 %v3203_v50  ;;  %2198 = vmatprep.subr.mxu1 %v3532_v14 }
 0x429   :  { %1262 = vmatpush1.msra.mxu0 %v3207_v31  ;;  %2199 = vmatpush3.msra.mxu1 %v2755_v53  ;;  %v3227_v53 = vld [vmem:[#allocation4 + $0x80] sm:$0xff] }
 0x42a   :  { %1263 = vmatprep.subr.mxu0 %v3211_v51  ;;  %2200 = vmatprep.subr.mxu1 %v3532_v14 }
 0x42b   :  { %1264 = vmatpush1.msra.mxu0 %v3215_v19  ;;  %2201 = vmatpush3.msra.mxu1 %v2761_v54  ;;  %v3235_v54 = vld [vmem:[#allocation4 + $0x68] sm:$0xff] }
 0x42c   :  { %1265 = vmatprep.subr.mxu0 %v3219_v52  ;;  %2202 = vmatprep.subr.mxu1 %v3532_v14 }
 0x42d   :  { %1266 = vmatpush1.msra.mxu0 %v3223_v25  ;;  %2203 = vmatpush3.msra.mxu1 %v2768_v55  ;;  %v3243_v55 = vld [vmem:[#allocation4 + $0x50] sm:$0xff] }
 0x42e   :  { %1267 = vmatprep.subr.mxu0 %v3227_v53  ;;  %2204 = vmatprep.subr.mxu1 %v3532_v14 }
 0x42f   :  { %1268 = vmatpush1.msra.mxu0 %v3231_v49  ;;  %2205 = vmatpush3.msra.mxu1 %v2774_v56  ;;  %v3251_v56 = vld [vmem:[#allocation4 + $0x38] sm:$0xff] }
 0x430   :  { %1269 = vmatprep.subr.mxu0 %v3235_v54  ;;  %2206 = vmatprep.subr.mxu1 %v3532_v14 }
 0x431   :  { %1270 = vmatpush1.msra.mxu0 %v3239_v37  ;;  %2207 = vmatpush3.msra.mxu1 %v2781_v57  ;;  %v3259_v57 = vld [vmem:[#allocation4 + $0x20] sm:$0xff] }
 0x432   :  { %1271 = vmatprep.subr.mxu0 %v3243_v55  ;;  %2208 = vmatprep.subr.mxu1 %v3532_v14 }
 0x433   :  { %1272 = vmatpush1.msra.mxu0 %v3247_v4  ;;  %2209 = vmatpush3.msra.mxu1 %v2787_v58  ;;  %v3267_v58 = vld [vmem:[#allocation4 + $0x8] sm:$0xff] }
 0x434   :  { %1273 = vmatprep.subr.mxu0 %v3251_v56  ;;  %2210 = vmatprep.subr.mxu1 %v3532_v14  ;;  %3553 = vst [vmem:[#allocation18_spill] sm:$0xff] %v3267_v58 }
 0x435   :  { %1274 = vmatpush1.msra.mxu0 %v3255_v3  ;;  %2211 = vmatpush3.msra.mxu1 %v2793_v59 }
 0x436   :  { %1275 = vmatprep.subr.mxu0 %v3259_v57  ;;  %2212 = vmatprep.subr.mxu1 %v3532_v14 }
 0x437   :  { %1276 = vmatpush1.msra.mxu0 %v3263_v2  ;;  %2213 = vmatpush3.msra.mxu1 %v3546_v6 }
 0x438   :  { %1277 = vmatprep.subr.mxu0 %v3267_v58  ;;  %2214 = vmatprep.subr.mxu1 %v3532_v14 }
 0x439   :  { %1278 = vmatpush1.msra.mxu0 %v3271_v61  ;;  %1311 = vmatprep.mubr.f32.mxu0 %v3532_v14 }
 0x43a   :  { %2215 = vmatpush3.msra.mxu1 %v3549_v10  ;;  %2216 = vmatprep.mubr.msk.f32.mxu1 %vm2497_vm2, %v3532_v14 }
 0x43b   :  { %1416 = vmatprep.subr.mxu0 %v3138_v11  ;;  %2219 = vmatprep.subr.mxu1 %v3532_v14 }
 0x4da   :  { %v1144_v59 = vpop.f32.mrf.mxu0  ;;  %v1215_v6 = vpop.f32.mrf.mxu1 }
 0x4db   :  { %v1219_v8 = vadd.f32 %v1144_v59, %v3555_v7  ;;  %v1233_v24 = vadd.f32 %v2913_v63, %v1215_v6  ;;  %v3320_v59 = vld [vmem:[#allocation4 + $0x100] sm:$0xff]  ;;  %v3326_v6 = vld [vmem:[#allocation4 + $0xe8] sm:$0xff]  ;;  %v3332_v7 = vld [vmem:[#allocation4 + $0xd0] sm:$0xff] }
 0x4dc   :  { %v2183_v12 = vpop.f32.mrf.mxu1  ;;  %v1146_v15 = vpop.f32.mrf.mxu0 }
 0x4dd   :  { %v1840_v13 = vmul.f32 -1.442695, %v1219_v8  ;;  %v1226_v17 = vadd.f32 %v1146_v15, %v3556_v16  ;;  %v3338_v8 = vld [vmem:[#allocation4 + $0xb8] sm:$0xff]  ;;  %v3344_v12 = vld [vmem:[#allocation4 + $0xa0] sm:$0xff]  ;;  %v3356_v15 = vld [vmem:[#allocation4 + $0x70] sm:$0xff] }
 0x4de   :  { %v3362_v16 = vld [vmem:[#allocation4 + $0x58] sm:$0xff] }
 0x4df   :  { %2338 = vpow2.f32 %v1840_v13  ;;  %v1841_v18 = vmul.f32 -1.442695, %v1226_v17  ;;  %v3350_v13 = vld [vmem:[#allocation4 + $0x88] sm:$0xff]  ;;  %v3368_v17 = vld [vmem:[#allocation4 + $0x40] sm:$0xff] }
 0x4e1   :  { %2340 = vpow2.f32 %v1841_v18  ;;  %v3374_v18 = vld [vmem:[#allocation4 + $0x28] sm:$0xff] }
 0x4e2   :  { %3558 = vst [vmem:[#allocation31_spill] sm:$0xff] %v3374_v18 }
 0x4ec   :  { %v2339_v10 = vpop.eup %2338 }
 0x4ed   :  { %v1223_v20 = vadd.f32 1.0, %v2339_v10  ;;  %v3381_v10 = vld [vmem:[#allocation4 + $0x10] sm:$0xff] }
 0x4ee   :  { %v2341_v21 = vpop.eup %2340  ;;  %3559 = vst [vmem:[#allocation13_spill] sm:$0xff] %v3381_v10 }
 0x4ef   :  { %2342 = vrcp.f32 %v1223_v20  ;;  %v1230_v23 = vadd.f32 1.0, %v2341_v21 }
 0x4f1   :  { %2344 = vrcp.f32 %v1230_v23  ;;  %v3560_v23 = vld [vmem:[#allocation26_spill] sm:$0xff] }
 0x4fc   :  { %v2343_v26 = vpop.eup %2342 }
 0x4fd   :  { %v1234_v27 = vmul.f32 %v2343_v26, %v1233_v24 }
 0x4fe   :  { %v2345_v32 = vpop.eup %2344 }
 0x4ff   :  { %v1235_v29 = vadd.f32 %v1234_v27, %v3557_v28  ;;  %v1237_v33 = vsub.f32 1.0, %v2345_v32  ;;  %v1239_v38 = vmul.f32 %v2345_v32, %v3147_v43  ;;  %v3314_v43 = vld [vmem:[#allocation4 + $0x118] sm:$0xff] }
 0x501   :  { %2346 = vtanh.f32 %v1235_v29  ;;  %v3561_v29 = vld [vmem:[#allocation27_spill] sm:$0xff] }
 0x50e   :  { %v2347_v34 = vpop.eup %2346 }
 0x50f   :  { %v1238_v35 = vmul.f32 %v2347_v34, %v1237_v33 }
 0x511   :  { %v3285_v39 = vadd.f32 %v1239_v38, %v1238_v35 }
 0x513   :  { %1312 = vmatmul.mubr.f32.vlgmr.msra.gmra.mxu0 %v3285_v39  ;;  %2217 = vmatmul.mubr.f32.vlgmr.msra.gmra.mxu1 %v3285_v39 }
 0x514   :  { %1417 = vmatpush1.msra.mxu0 %v3151_v5  ;;  %2220 = vmatpush3.msra.mxu1 %v3290_v40 }
 0x515   :  { %1418 = vmatprep.subr.mxu0 %v3155_v46  ;;  %2221 = vmatprep.subr.mxu1 %v3532_v14 }
 0x516   :  { %1419 = vmatpush1.msra.mxu0 %v3159_v47  ;;  %2222 = vmatpush3.msra.mxu1 %v3296_v41 }
 0x517   :  { %1420 = vmatprep.subr.mxu0 %v3163_v60  ;;  %2223 = vmatprep.subr.mxu1 %v3532_v14 }
 0x518   :  { %1421 = vmatpush1.msra.mxu0 %v3167_v1  ;;  %2224 = vmatpush3.msra.mxu1 %v3302_v44 }
 0x519   :  { %1422 = vmatprep.subr.mxu0 %v3171_v30  ;;  %2225 = vmatprep.subr.mxu1 %v3532_v14 }
 0x51a   :  { %1423 = vmatpush1.msra.mxu0 %v3175_v62  ;;  %2226 = vmatpush3.msra.mxu1 %v3308_v45 }
 0x51b   :  { %1424 = vmatprep.subr.mxu0 %v3179_v36  ;;  %2227 = vmatprep.subr.mxu1 %v3532_v14 }
 0x51c   :  { %1425 = vmatpush1.msra.mxu0 %v3183_v9  ;;  %2228 = vmatpush3.msra.mxu1 %v3314_v43 }
 0x51d   :  { %1426 = vmatprep.subr.mxu0 %v3187_v42  ;;  %2229 = vmatprep.subr.mxu1 %v3532_v14 }
 0x51e   :  { %1427 = vmatpush1.msra.mxu0 %v3191_v0  ;;  %2230 = vmatpush3.msra.mxu1 %v3320_v59 }
 0x51f   :  { %1428 = vmatprep.subr.mxu0 %v3195_v48  ;;  %2231 = vmatprep.subr.mxu1 %v3532_v14 }
 0x520   :  { %1429 = vmatpush1.msra.mxu0 %v3199_v22  ;;  %2232 = vmatpush3.msra.mxu1 %v3326_v6 }
 0x521   :  { %1430 = vmatprep.subr.mxu0 %v3203_v50  ;;  %2233 = vmatprep.subr.mxu1 %v3532_v14 }
 0x522   :  { %1431 = vmatpush1.msra.mxu0 %v3207_v31  ;;  %2234 = vmatpush3.msra.mxu1 %v3332_v7 }
 0x523   :  { %1432 = vmatprep.subr.mxu0 %v3211_v51  ;;  %2235 = vmatprep.subr.mxu1 %v3532_v14 }
 0x524   :  { %1433 = vmatpush1.msra.mxu0 %v3215_v19  ;;  %2236 = vmatpush3.msra.mxu1 %v3338_v8 }
 0x525   :  { %1434 = vmatprep.subr.mxu0 %v3219_v52  ;;  %2237 = vmatprep.subr.mxu1 %v3532_v14 }
 0x526   :  { %1435 = vmatpush1.msra.mxu0 %v3223_v25  ;;  %2238 = vmatpush3.msra.mxu1 %v3344_v12 }
 0x527   :  { %1436 = vmatprep.subr.mxu0 %v3227_v53  ;;  %2239 = vmatprep.subr.mxu1 %v3532_v14 }
 0x528   :  { %1437 = vmatpush1.msra.mxu0 %v3231_v49  ;;  %2240 = vmatpush3.msra.mxu1 %v3350_v13 }
 0x529   :  { %1438 = vmatprep.subr.mxu0 %v3235_v54  ;;  %2241 = vmatprep.subr.mxu1 %v3532_v14 }
 0x52a   :  { %1439 = vmatpush1.msra.mxu0 %v3239_v37  ;;  %2242 = vmatpush3.msra.mxu1 %v3356_v15 }
 0x52b   :  { %1440 = vmatprep.subr.mxu0 %v3243_v55  ;;  %2243 = vmatprep.subr.mxu1 %v3532_v14 }
 0x52c   :  { %1441 = vmatpush1.msra.mxu0 %v3247_v4  ;;  %2244 = vmatpush3.msra.mxu1 %v3362_v16 }
 0x52d   :  { %1442 = vmatprep.subr.mxu0 %v3251_v56  ;;  %2245 = vmatprep.subr.mxu1 %v3532_v14 }
 0x52e   :  { %1443 = vmatpush1.msra.mxu0 %v3255_v3  ;;  %2246 = vmatpush3.msra.mxu1 %v3368_v17 }
 0x52f   :  { %1444 = vmatprep.subr.mxu0 %v3259_v57  ;;  %2247 = vmatprep.subr.mxu1 %v3532_v14 }
 0x530   :  { %1445 = vmatpush1.msra.mxu0 %v3263_v2  ;;  %2248 = vmatpush3.msra.mxu1 %v3374_v18  ;;  %v3562_v18 = vld [vmem:[#allocation35_spill] sm:$0xff] }
 0x531   :  { %1446 = vmatprep.subr.mxu0 %v3267_v58  ;;  %2249 = vmatprep.subr.mxu1 %v3532_v14 }
 0x532   :  { %1447 = vmatpush1.msra.mxu0 %v3271_v61  ;;  %1480 = vmatprep.mubr.f32.mxu0 %v3532_v14 }
 0x533   :  { %2250 = vmatpush3.msra.mxu1 %v3381_v10  ;;  %2251 = vmatprep.mubr.msk.f32.mxu1 %vm2497_vm2, %v3532_v14 }
 0x534   :  { %1585 = vmatprep.subr.mxu0 %v3138_v11  ;;  %2254 = vmatprep.subr.mxu1 %v3532_v14 }
 0x5d3   :  { %v1313_v20 = vpop.f32.mrf.mxu0  ;;  %v1384_v21 = vpop.f32.mrf.mxu1 }
 0x5d4   :  { %v1388_v24 = vadd.f32 %v1313_v20, %v3560_v23  ;;  %v1402_v11 = vadd.f32 %v2913_v63, %v1384_v21  ;;  %v3563_v63 = vld [vmem:[#allocation31_spill] sm:$0xff] }
 0x5d5   :  { %v2218_v26 = vpop.f32.mrf.mxu1  ;;  %v1315_v28 = vpop.f32.mrf.mxu0 }
 0x5d6   :  { %v1842_v27 = vmul.f32 -1.442695, %v1388_v24  ;;  %v1395_v32 = vadd.f32 %v1315_v28, %v3561_v29 }
 0x5d8   :  { %2348 = vpow2.f32 %v1842_v27  ;;  %v1843_v33 = vmul.f32 -1.442695, %v1395_v32 }
 0x5da   :  { %2350 = vpow2.f32 %v1843_v33 }
 0x5e5   :  { %v2349_v34 = vpop.eup %2348 }
 0x5e6   :  { %v1392_v35 = vadd.f32 1.0, %v2349_v34 }
 0x5e7   :  { %v2351_v38 = vpop.eup %2350 }
 0x5e8   :  { %2352 = vrcp.f32 %v1392_v35  ;;  %v1399_v10 = vadd.f32 1.0, %v2351_v38  ;;  %v1848_v35 = vld [vmem:[%s3486_s5] ss:$0 sm:$0xff] }
 0x5ea   :  { %2354 = vrcp.f32 %v1399_v10 }
 0x5f5   :  { %v2353_v61 = vpop.eup %2352 }
 0x5f6   :  { %v1403_v58 = vmul.f32 %v2353_v61, %v1402_v11  ;;  %v3570_v61 = vld [vmem:[#allocation30_spill] sm:$0xff] }
 0x5f7   :  { %v2355_v23 = vpop.eup %2354 }
 0x5f8   :  { %v1404_v20 = vadd.f32 %v3562_v18, %v1403_v58  ;;  %v1406_v24 = vsub.f32 1.0, %v2355_v23  ;;  %v1408_v28 = vmul.f32 %v2355_v23, %v3285_v39  ;;  %v1849_v23 = vld [vmem:[#allocation3] ss:$0 sm:$0xff] }
 0x5fa   :  { %2356 = vtanh.f32 %v1404_v20  ;;  %v2498_v20 = vmov 0  }
 0x5fb   :  { %2297 = vset.pattern.permute.xlu0 %v2498_v20 }
 0x607   :  { %v2357_v26 = vpop.eup %2356 }
 0x608   :  { %v1407_v27 = vmul.f32 %v2357_v26, %v1406_v24 }
 0x60a   :  { %v3393_v29 = vadd.f32 %v1408_v28, %v1407_v27 }
 0x60c   :  { %1481 = vmatmul.mubr.f32.vlgmr.msra.gmra.mxu0 %v3393_v29  ;;  %2252 = vmatmul.mubr.f32.vlgmr.msra.gmra.mxu1 %v3393_v29 }
 0x60d   :  { %1586 = vmatpush1.msra.mxu0 %v3151_v5  ;;  %2255 = vmatpush3.msra.mxu1 %v3290_v40  ;;  %v3564_v5 = vld [vmem:[#allocation18_spill] sm:$0xff] }
 0x60e   :  { %1587 = vmatprep.subr.mxu0 %v3155_v46  ;;  %2256 = vmatprep.subr.mxu1 %v3532_v14  ;;  %v3565_v46 = vld [vmem:[#allocation19_spill] sm:$0xff] }
 0x60f   :  { %1588 = vmatpush1.msra.mxu0 %v3159_v47  ;;  %2257 = vmatpush3.msra.mxu1 %v3296_v41  ;;  %v3566_v47 = vld [vmem:[#allocation13_spill] sm:$0xff] }
 0x610   :  { %1589 = vmatprep.subr.mxu0 %v3163_v60  ;;  %2258 = vmatprep.subr.mxu1 %v3532_v14 }
 0x611   :  { %1590 = vmatpush1.msra.mxu0 %v3167_v1  ;;  %2259 = vmatpush3.msra.mxu1 %v3302_v44 }
 0x612   :  { %1591 = vmatprep.subr.mxu0 %v3171_v30  ;;  %2260 = vmatprep.subr.mxu1 %v3532_v14  ;;  %v3567_v30 = vld [vmem:[#allocation28_spill] sm:$0xff] }
 0x613   :  { %1592 = vmatpush1.msra.mxu0 %v3175_v62  ;;  %2261 = vmatpush3.msra.mxu1 %v3308_v45  ;;  %v3571_v45 = vld [vmem:[#allocation32_spill] sm:$0xff] }
 0x614   :  { %1593 = vmatprep.subr.mxu0 %v3179_v36  ;;  %2262 = vmatprep.subr.mxu1 %v3532_v14 }
 0x615   :  { %1594 = vmatpush1.msra.mxu0 %v3183_v9  ;;  %2263 = vmatpush3.msra.mxu1 %v3314_v43 }
 0x616   :  { %1595 = vmatprep.subr.mxu0 %v3187_v42  ;;  %2264 = vmatprep.subr.mxu1 %v3532_v14 }
 0x617   :  { %1596 = vmatpush1.msra.mxu0 %v3191_v0  ;;  %2265 = vmatpush3.msra.mxu1 %v3320_v59  ;;  %v3568_v0 = vld [vmem:[#allocation29_spill] sm:$0xff] }
 0x618   :  { %1597 = vmatprep.subr.mxu0 %v3195_v48  ;;  %2266 = vmatprep.subr.mxu1 %v3532_v14 }
 0x619   :  { %1598 = vmatpush1.msra.mxu0 %v3199_v22  ;;  %2267 = vmatpush3.msra.mxu1 %v3326_v6 }
 0x61a   :  { %1599 = vmatprep.subr.mxu0 %v3203_v50  ;;  %2268 = vmatprep.subr.mxu1 %v3532_v14 }
 0x61b   :  { %1600 = vmatpush1.msra.mxu0 %v3207_v31  ;;  %2269 = vmatpush3.msra.mxu1 %v3332_v7 }
 0x61c   :  { %1601 = vmatprep.subr.mxu0 %v3211_v51  ;;  %2270 = vmatprep.subr.mxu1 %v3532_v14 }
 0x61d   :  { %1602 = vmatpush1.msra.mxu0 %v3215_v19  ;;  %2271 = vmatpush3.msra.mxu1 %v3338_v8 }
 0x61e   :  { %1603 = vmatprep.subr.mxu0 %v3219_v52  ;;  %2272 = vmatprep.subr.mxu1 %v3532_v14 }
 0x61f   :  { %1604 = vmatpush1.msra.mxu0 %v3223_v25  ;;  %2273 = vmatpush3.msra.mxu1 %v3344_v12 }
 0x620   :  { %1605 = vmatprep.subr.mxu0 %v3227_v53  ;;  %2274 = vmatprep.subr.mxu1 %v3532_v14 }
 0x621   :  { %1606 = vmatpush1.msra.mxu0 %v3231_v49  ;;  %2275 = vmatpush3.msra.mxu1 %v3350_v13  ;;  %v3569_v49 = vld [vmem:[#allocation38_spill] sm:$0xff] }
 0x622   :  { %1607 = vmatprep.subr.mxu0 %v3235_v54  ;;  %2276 = vmatprep.subr.mxu1 %v3532_v14 }
 0x623   :  { %1608 = vmatpush1.msra.mxu0 %v3239_v37  ;;  %2277 = vmatpush3.msra.mxu1 %v3356_v15 }
 0x624   :  { %1609 = vmatprep.subr.mxu0 %v3243_v55  ;;  %2278 = vmatprep.subr.mxu1 %v3532_v14 }
 0x625   :  { %1610 = vmatpush1.msra.mxu0 %v3247_v4  ;;  %2279 = vmatpush3.msra.mxu1 %v3362_v16 }
 0x626   :  { %1611 = vmatprep.subr.mxu0 %v3251_v56  ;;  %2280 = vmatprep.subr.mxu1 %v3532_v14 }
 0x627   :  { %1612 = vmatpush1.msra.mxu0 %v3255_v3  ;;  %2281 = vmatpush3.msra.mxu1 %v3368_v17  ;;  %v3572_v17 = vld [vmem:[#allocation37_spill] sm:$0xff] }
 0x628   :  { %1613 = vmatprep.subr.mxu0 %v3259_v57  ;;  %2282 = vmatprep.subr.mxu1 %v3532_v14 }
 0x629   :  { %1614 = vmatpush1.msra.mxu0 %v3263_v2  ;;  %2283 = vmatpush3.msra.mxu1 %v3563_v63 }
 0x62a   :  { %1615 = vmatprep.subr.mxu0 %v3564_v5  ;;  %2284 = vmatprep.subr.mxu1 %v3532_v14 }
 0x62b   :  { %1616 = vmatpush1.msra.mxu0 %v3565_v46  ;;  %1649 = vmatprep.mubr.f32.mxu0 %v3532_v14 }
 0x62c   :  { %2285 = vmatpush3.msra.mxu1 %v3566_v47  ;;  %2286 = vmatprep.mubr.msk.f32.mxu1 %vm2497_vm2, %v3532_v14  ;;  %v2426_v14 = vld [vmem:[%s3485_s4] ss:$0 sm:$0xff] }
 0x6cc   :  { %v1482_v60 = vpop.f32.mrf.mxu0  ;;  %v1553_v1 = vpop.f32.mrf.mxu1 }
 0x6cd   :  { %v1557_v62 = vadd.f32 %v1482_v60, %v3567_v30  ;;  %v1571_v52 = vadd.f32 %v2426_v14, %v1553_v1 }
 0x6ce   :  { %v2253_v36 = vpop.f32.mrf.mxu1  ;;  %v1484_v42 = vpop.f32.mrf.mxu0 }
 0x6cf   :  { %v1844_v9 = vmul.f32 -1.442695, %v1557_v62  ;;  %v1564_v48 = vadd.f32 %v1484_v42, %v3568_v0 }
 0x6d1   :  { %2358 = vpow2.f32 %v1844_v9  ;;  %v1845_v22 = vmul.f32 -1.442695, %v1564_v48 }
 0x6d3   :  { %2360 = vpow2.f32 %v1845_v22 }
 0x6de   :  { %v2359_v50 = vpop.eup %2358 }
 0x6df   :  { %v1561_v31 = vadd.f32 1.0, %v2359_v50 }
 0x6e0   :  { %v2361_v51 = vpop.eup %2360 }
 0x6e1   :  { %2362 = vrcp.f32 %v1561_v31  ;;  %v1568_v19 = vadd.f32 1.0, %v2361_v51 }
 0x6e3   :  { %2364 = vrcp.f32 %v1568_v19 }
 0x6ee   :  { %v2363_v25 = vpop.eup %2362 }
 0x6ef   :  { %v1572_v53 = vmul.f32 %v2363_v25, %v1571_v52 }
 0x6f0   :  { %v2365_v37 = vpop.eup %2364 }
 0x6f1   :  { %v1573_v54 = vadd.f32 %v1572_v53, %v3569_v49  ;;  %v1575_v55 = vsub.f32 1.0, %v2365_v37  ;;  %v1577_v3 = vmul.f32 %v2365_v37, %v3393_v29 }
 0x6f3   :  { %2366 = vtanh.f32 %v1573_v54 }
 0x700   :  { %v2367_v4 = vpop.eup %2366 }
 0x701   :  { %v1576_v56 = vmul.f32 %v2367_v4, %v1575_v55 }
 0x703   :  { %v1578_v57 = vadd.f32 %v1577_v3, %v1576_v56 }
 0x705   :  { %1650 = vmatmul.mubr.f32.vlgmr.msra.gmra.mxu0 %v1578_v57  ;;  %2287 = vmatmul.mubr.f32.vlgmr.msra.gmra.mxu1 %v1578_v57 }
 0x7c5   :  { %v1651_v2 = vpop.f32.mrf.mxu0  ;;  %v1722_v58 = vpop.f32.mrf.mxu1 }
 0x7c6   :  { %v1726_v39 = vadd.f32 %v1651_v2, %v3570_v61  ;;  %v1740_v13 = vadd.f32 %v2426_v14, %v1722_v58 }
 0x7c7   :  { %v2288_v40 = vpop.f32.mrf.mxu1  ;;  %v1653_v44 = vpop.f32.mrf.mxu0 }
 0x7c8   :  { %v1846_v41 = vmul.f32 -1.442695, %v1726_v39  ;;  %v1733_v43 = vadd.f32 %v1653_v44, %v3571_v45 }
 0x7ca   :  { %2368 = vpow2.f32 %v1846_v41  ;;  %v1847_v59 = vmul.f32 -1.442695, %v1733_v43 }
 0x7cc   :  { %2370 = vpow2.f32 %v1847_v59 }
 0x7d7   :  { %v2369_v6 = vpop.eup %2368 }
 0x7d8   :  { %v1730_v7 = vadd.f32 1.0, %v2369_v6 }
 0x7d9   :  { %v2371_v8 = vpop.eup %2370 }
 0x7da   :  { %2372 = vrcp.f32 %v1730_v7  ;;  %v1737_v12 = vadd.f32 1.0, %v2371_v8 }
 0x7dc   :  { %2374 = vrcp.f32 %v1737_v12 }
 0x7e7   :  { %v2373_v15 = vpop.eup %2372 }
 0x7e8   :  { %v1741_v16 = vmul.f32 %v2373_v15, %v1740_v13 }
 0x7e9   :  { %v2375_v10 = vpop.eup %2374 }
 0x7ea   :  { %v1742_v18 = vadd.f32 %v3572_v17, %v1741_v16  ;;  %v1744_v21 = vsub.f32 1.0, %v2375_v10  ;;  %v1746_v34 = vmul.f32 %v2375_v10, %v1578_v57 }
 0x7ec   :  { %2376 = vtanh.f32 %v1742_v18 }
 0x7f9   :  { %v2377_v32 = vpop.eup %2376 }
 0x7fa   :  { %v1745_v33 = vmul.f32 %v2377_v32, %v1744_v21 }
 0x7fc   :  { %v1747_v38 = vadd.f32 %v1746_v34, %v1745_v33 }
 0x7fe   :  { %v1759_v11 = vmul.f32 %v1848_v35, %v1747_v38  ;;  %1748 = vst [vmem:[#allocation7] sm:$0xff] %v1747_v38 }
 0x800   :  { %1760 = vadd.xlane.f32.xlu0 %v1759_v11 }
 0x889   :  { %v1761_v24 = vpop.xlane.xlu0 %1760 }
 0x88a   :  { %2458 = shalt.err (!%p2455_p9)
}
 0x88b   :  { %1785 = dma.vmem_to_hbm [thread:$0]  %s1783_s16, 128, %s3488_s7, [#allocation6]   ;;  %v1769_v26 = vadd.f32 %v1849_v23, %v1761_v24 }
 0x88c   :  { %s2500_s3 = smov [#allocation8]  }
 0x88d   :  { %1772 = vperm.xlu0 %2297, %v1769_v26   ;;  %s1792_s19 = sshll.u32 %s2500_s3, 4  ;;  %s1793_s19 = int_to_ptr.vmem [resolvable:$true] %s1792_s19 }
 0x88e   :  { %s2467_s20 = scalar_lea.vmem %s1793_s19, 128  ;;  %p2472_p11 = scmp.lt.s32.totalorder %s1793_s19, %s1793_s19 }
 0x88f   :  { %p2468_p10 = scmp.ne.s32.totalorder %s1793_s19, %s2467_s20  ;;  %p2473_p12 = scmp.lt.s32.totalorder %s2467_s20, %s2467_s20 }
 0x891   :  { %p2474_p13 = por %p2473_p12, %p2472_p11 }
 0x893   :  { %p2475_p0 = pnand %p2474_p13, %p2468_p10 }
 0x908   :  { %v1773_v27 = vpop.permute.xlu0 %1772 }
 0x909   :  { %1775 = vst [vmem:[#allocation8] sm:$0xff] %v1773_v27 }
 0x90a   :  { %2478 = shalt.err (!%p2475_p0)
}
 0x90b   :  { %1795 = dma.vmem_to_hbm [thread:$0]  %s1793_s19, 128, %s3489_s8, [#allocation9]  }
 0x90c   :  { %2489 = dma.done.wait [#allocation6], 128  }
 0x90d   :  { %2490 = vsyncadd [#allocation6], 4294967168 }
 0x90e   :  { %2491 = dma.done.wait [#allocation9], 128  }
 0x90f   :  { %2492 = vsyncadd [#allocation9], 4294967168 }
 0x910   :  { %1802 = vsyncpa [#allocation5], 1 }
 0x911   :  { %1803 = vsyncpa [#allocation6], 1 }
 0x912   :  { %1804 = vsyncpa [#allocation9], 1 }

</bundles_post_ra>
